<compile_context>
chip_gen: v5e
topology: v5e:2x2
jax: 0.10.0
libtpu: 0.0.40
codegen_flags: <defaults>
</compile_context>

<pallas_src>
import numpy as np
import jax
import jax.numpy as jnp
from jax.experimental import pallas as pl
from jax.experimental.pallas import tpu as pltpu

_EPS = 1e-5
_VMEM = pl.BlockSpec(memory_space=pltpu.MemorySpace.VMEM)
_SMEM = pl.BlockSpec(memory_space=pltpu.MemorySpace.SMEM)


# ---------------------------------------------------------------------------
# Host-side constant builders (executed once at param-init / call time).
# ---------------------------------------------------------------------------
def _banded_conv_weight(w33, feat):
    """w33: [3(dy), 3(dx), Cin, Cout] -> 3 banded mats [F*Cin, F*Cout] (dx + F-padding folded)."""
    cin, cout = w33.shape[2], w33.shape[3]
    wb = np.zeros((3, feat * cin, feat * cout), np.float32)
    for dy in range(3):
        for fo in range(feat):
            for dx in range(3):
                fi = fo + dx - 1
                if 0 <= fi < feat:
                    wb[dy, fi * cin:(fi + 1) * cin, fo * cout:(fo + 1) * cout] = w33[dy, dx]
    return wb


def _channel_pool_mats(feat, cout):
    """G [F*Cout, Cout] sums lanes per channel; E = G.T broadcasts per-channel -> per-lane."""
    g = np.zeros((feat * cout, cout), np.float32)
    for f in range(feat):
        for c in range(cout):
            g[f * cout + c, c] = 1.0
    return g, np.ascontiguousarray(g.T)


def _avgpool_mat(feat, cout):
    """F.avg_pool2d(kernel=(1,2)) as a constant matrix [F*Cout, (F//2)*Cout]."""
    p = np.zeros((feat * cout, (feat // 2) * cout), np.float32)
    for f in range(feat):
        for c in range(cout):
            p[f * cout + c, (f // 2) * cout + c] = 0.5
    return p


def _shift_mats(B, T):
    """Row-shift matrices [B*T, B*T]: pick time-row t-1 / t+1 with zero at the T edges."""
    n = B * T
    sp = np.zeros((n, n), np.float32)   # previous time step (dy = -1)
    sn = np.zeros((n, n), np.float32)   # next time step     (dy = +1)
    for b in range(B):
        for t in range(T):
            r = b * T + t
            if t > 0:
                sp[r, r - 1] = 1.0
            if t < T - 1:
                sn[r, r + 1] = 1.0
    return sp, sn


# ---------------------------------------------------------------------------
# The single fused encoder kernel.
# ---------------------------------------------------------------------------
def _make_encoder_kernel(B, T, block_cfgs, num_blocks):
    """block_cfgs: list of (Cin, Cout, F) for the num_blocks+1 conv blocks."""
    nb_total = len(block_cfgs)

    def kernel(*refs):
        pos = 0

        def take(n):
            nonlocal pos
            out = refs[pos:pos + n]
            pos += n
            return out

        x_ref, cond_ref, sp_ref, sn_ref, bn0g_ref, bn0b_ref = take(6)
        blk_refs = [take(8 if i < num_blocks else 7) for i in range(nb_total)]
        out_refs = take(nb_total)            # concat_0 .. concat_{nb-1}, final

        # ---- bn0: BatchNorm2d(1), train-mode stats over every element (one pass) ----
        x = x_ref[...]                                        # [B*T, F0]  (Cin == 1)
        n0 = float(x.shape[0] * x.shape[1])
        s0 = jnp.sum(x)
        q0 = jnp.sum(x * x)
        mean0 = s0 / n0
        var0 = q0 / n0 - mean0 * mean0                        # f32; inputs ~N(0,1): no cancellation issue
        x = (x - mean0) * jax.lax.rsqrt(var0 + _EPS) * bn0g_ref[0, 0] + bn0b_ref[0, 0]

        cond = cond_ref[...]                                  # [B*T, cond_dim]
        sp = sp_ref[...]                                      # [B*T, B*T]
        sn = sn_ref[...]

        for i, (_cin, cout, feat) in enumerate(block_cfgs):
            pooled = i < num_blocks
            if pooled:
                w_ref, bng_ref, bnb_ref, fw_ref, fb_ref, g_ref, e_ref, p_ref = blk_refs[i]
            else:
                w_ref, bng_ref, bnb_ref, fw_ref, fb_ref, g_ref, e_ref = blk_refs[i]
            fc = feat * cout

            # ---- Conv2d 3x3, pad=1, no bias: banded-weight dots (dy via shift matrices) ----
            xp = jnp.dot(sp, x, preferred_element_type=jnp.float32)     # time row t-1 (0 at t==0)
            xn = jnp.dot(sn, x, preferred_element_type=jnp.float32)     # time row t+1 (0 at t==T-1)
            conv = (jnp.dot(xp, w_ref[0], preferred_element_type=jnp.float32)
                    + jnp.dot(x, w_ref[1], preferred_element_type=jnp.float32)
                    + jnp.dot(xn, w_ref[2], preferred_element_type=jnp.float32))   # [B*T, F*Cout]

            # ---- BatchNorm2d (train mode): one-pass sum / sum-of-squares per channel ----
            n = float(B * T * feat)
            lane_s = jnp.sum(conv, axis=0, keepdims=True)               # [1, F*Cout]
            lane_q = jnp.sum(conv * conv, axis=0, keepdims=True)
            s_c = jnp.dot(lane_s, g_ref[...], preferred_element_type=jnp.float32)   # [1, Cout]
            q_c = jnp.dot(lane_q, g_ref[...], preferred_element_type=jnp.float32)
            mean_c = s_c / n
            var_c = q_c / n - mean_c * mean_c                           # biased variance (train mode)
            scale_c = bng_ref[...] * jax.lax.rsqrt(var_c + _EPS)        # [1, Cout]
            shift_c = bnb_ref[...] - mean_c * scale_c
            scale_l = jnp.dot(scale_c, e_ref[...], preferred_element_type=jnp.float32)  # [1, F*Cout]
            shift_l = jnp.dot(shift_c, e_ref[...], preferred_element_type=jnp.float32)

            # ---- BN + ReLU + FiLM (gamma|beta fused in ONE matmul) ----
            h = jnp.maximum(conv * scale_l + shift_l, 0.0)
            film = jnp.dot(cond, fw_ref[...], preferred_element_type=jnp.float32) + fb_ref[...]
            y = h * film[:, :fc] + film[:, fc:]                          # [B*T, F*Cout]

            if pooled:
                out_refs[i][...] = y                                     # concat_tensors[i]
                # F.avg_pool2d(kernel_size=(1, 2)) as a constant 0.5 pooling matmul
                x = jnp.dot(y, p_ref[...], preferred_element_type=jnp.float32)
            else:
                out_refs[nb_total - 1][...] = y                          # final output

    return kernel


# ---------------------------------------------------------------------------
# Parameter construction (deterministic; shapes follow Encoder.__init__).
# ---------------------------------------------------------------------------
def init_encoder_params(key, config):
    in_ch = config["in_channels"]
    cond_dim = config["cond_dim"]
    feat = config["input_size"]
    nb = config["num_blocks"]
    keys = iter(jax.random.split(key, 8 * (nb + 1)))

    params = {
        "bn0_gamma": jnp.ones((1, 1), jnp.float32),
        "bn0_beta": jnp.zeros((1, 1), jnp.float32),
        "blocks": [],
    }
    out_ch = 2
    for i in range(nb + 1):
        # torch Conv2d weight [Cout, Cin, 3, 3] stored as [dy, dx, Cin, Cout], then banded.
        w33 = 0.1 * jax.random.normal(next(keys), (3, 3, in_ch, out_ch), jnp.float32)
        # torch FiLM Conv1d weight [Cout*feat, cond_dim, 1] (out-channel k = c*feat + f),
        # stored pre-permuted to [cond_dim, feat, Cout] (feat-major columns).
        gw = 0.1 * jax.random.normal(next(keys), (cond_dim, feat, out_ch), jnp.float32)
        gb = 0.1 * jax.random.normal(next(keys), (feat, out_ch), jnp.float32)
        bw = 0.1 * jax.random.normal(next(keys), (cond_dim, feat, out_ch), jnp.float32)
        bb = 0.1 * jax.random.normal(next(keys), (feat, out_ch), jnp.float32)

        gmat, emat = _channel_pool_mats(feat, out_ch)
        blk = {
            "conv_w": jnp.asarray(_banded_conv_weight(np.asarray(w33), feat)),   # [3, F*Cin, F*Cout]
            "bn_gamma": 1.0 + 0.1 * jax.random.normal(next(keys), (1, out_ch), jnp.float32),
            "bn_beta": 0.1 * jax.random.normal(next(keys), (1, out_ch), jnp.float32),
            # gamma | beta fused along N -> single FiLM matmul in the kernel
            "film_w": jnp.concatenate([gw.reshape(cond_dim, feat * out_ch),
                                       bw.reshape(cond_dim, feat * out_ch)], axis=1),
            "film_b": jnp.concatenate([gb.reshape(1, feat * out_ch),
                                       bb.reshape(1, feat * out_ch)], axis=1),
            "gmat": jnp.asarray(gmat),        # [F*Cout, Cout]  channel-sum pooling
            "emat": jnp.asarray(emat),        # [Cout, F*Cout]  channel -> lane broadcast
            "in_channels": in_ch,
            "channels": out_ch,
            "feature_size": feat,
        }
        if i < nb:
            blk["pool"] = jnp.asarray(_avgpool_mat(feat, out_ch))   # [F*Cout, (F//2)*Cout]
        params["blocks"].append(blk)
        in_ch = out_ch
        out_ch *= 2
        feat //= 2
    return params


# ---------------------------------------------------------------------------
# Encoder forward: one fused pallas_call; only trivial layout glue outside it.
# ---------------------------------------------------------------------------
def encoder_forward(params, x_nchw, condition, num_blocks):
    B, C0, T, F0 = x_nchw.shape
    assert C0 == 1, "bn0 is BatchNorm2d(1): input must have one channel"
    cond_dim = condition.shape[1]
    blocks = params["blocks"]
    nb_total = len(blocks)
    assert nb_total == num_blocks + 1

    # One-time layout glue (all tiny, done once, before the single kernel):
    x2 = x_nchw.reshape(B * T, F0).astype(jnp.float32)                       # free reshape (C == 1)
    cond2 = jnp.transpose(condition.astype(jnp.float32), (0, 2, 1)).reshape(B * T, cond_dim)
    sp, sn = _shift_mats(B, T)

    block_cfgs = [(blk["in_channels"], blk["channels"], blk["feature_size"]) for blk in blocks]
    kernel = _make_encoder_kernel(B, T, block_cfgs, num_blocks)

    inputs = [x2, cond2, jnp.asarray(sp), jnp.asarray(sn),
              params["bn0_gamma"], params["bn0_beta"]]
    in_specs = [_VMEM, _VMEM, _VMEM, _VMEM, _SMEM, _SMEM]
    for i, blk in enumerate(blocks):
        inputs += [blk["conv_w"], blk["bn_gamma"], blk["bn_beta"],
                   blk["film_w"], blk["film_b"], blk["gmat"], blk["emat"]]
        in_specs += [_VMEM] * 7
        if i < num_blocks:
            inputs.append(blk["pool"])
            in_specs.append(_VMEM)

    # Outputs: concat_0..concat_{nb-1}, final -- all lane-dense 2-D slabs [B*T, F*Cout].
    out_shapes = tuple(
        jax.ShapeDtypeStruct((B * T, blk["feature_size"] * blk["channels"]), jnp.float32)
        for blk in blocks)

    # TODO(synk): for realistic B/T/F, add a grid over batch/time tiles with
    # dimension_semantics=("parallel", ...) (v7x dual TensorCore), tiled BlockSpecs and an
    # explicit vmem_limit_bytes (v7x has 64 MiB VMEM); at these sizes a single gridless
    # invocation is optimal (the workload is launch-latency bound).  bf16 activations would
    # help on v6e/v7x once scaled up (keep f32 accumulation / BN stats).
    outs = pl.pallas_call(
        kernel,
        out_shape=out_shapes,
        in_specs=in_specs,
        out_specs=tuple(_VMEM for _ in out_shapes),
    )(*inputs)

    def to_nchw(y2d, cout, feat):
        return jnp.transpose(y2d.reshape(B, T, feat, cout), (0, 3, 1, 2))

    concat_tensors = [to_nchw(outs[i], blocks[i]["channels"], blocks[i]["feature_size"])
                      for i in range(num_blocks)]
    final = to_nchw(outs[num_blocks], blocks[num_blocks]["channels"],
                    blocks[num_blocks]["feature_size"])
    return final, concat_tensors


# ---------------------------------------------------------------------------
if __name__ == "__main__":
    config = {"in_channels": 1, "momentum": 0.01, "cond_dim": 4,
              "input_size": 16, "num_blocks": 2}

    key = jax.random.PRNGKey(0)
    k_params, k_x, k_c = jax.random.split(key, 3)
    params = init_encoder_params(k_params, config)

    B, T = 2, 8
    x = jax.random.normal(k_x, (B, 1, T, config["input_size"]), jnp.float32)   # NCHW
    cond = jax.random.normal(k_c, (B, config["cond_dim"], T), jnp.float32)

    out, concat = encoder_forward(params, x, cond, config["num_blocks"])
    jax.block_until_ready((out, concat))

    assert out.shape == (B, 8, T, 4), out.shape
    assert concat[0].shape == (B, 2, T, 16), concat[0].shape
    assert concat[1].shape == (B, 4, T, 8), concat[1].shape
    print("KERNEL_OK")
</pallas_src>

<mosaic_0001>
module attributes {stable_mosaic.version = 11 : i64} {
  func.func @kernel(%arg0: memref<16x16xf32, #tpu.memory_space<vmem>>, %arg1: memref<16x4xf32, #tpu.memory_space<vmem>>, %arg2: memref<16x16xf32, #tpu.memory_space<vmem>>, %arg3: memref<16x16xf32, #tpu.memory_space<vmem>>, %arg4: memref<1x1xf32, #tpu.memory_space<smem>>, %arg5: memref<1x1xf32, #tpu.memory_space<smem>>, %arg6: memref<3x16x32xf32, #tpu.memory_space<vmem>>, %arg7: memref<1x2xf32, #tpu.memory_space<vmem>>, %arg8: memref<1x2xf32, #tpu.memory_space<vmem>>, %arg9: memref<4x64xf32, #tpu.memory_space<vmem>>, %arg10: memref<1x64xf32, #tpu.memory_space<vmem>>, %arg11: memref<32x2xf32, #tpu.memory_space<vmem>>, %arg12: memref<2x32xf32, #tpu.memory_space<vmem>>, %arg13: memref<32x16xf32, #tpu.memory_space<vmem>>, %arg14: memref<3x16x32xf32, #tpu.memory_space<vmem>>, %arg15: memref<1x4xf32, #tpu.memory_space<vmem>>, %arg16: memref<1x4xf32, #tpu.memory_space<vmem>>, %arg17: memref<4x64xf32, #tpu.memory_space<vmem>>, %arg18: memref<1x64xf32, #tpu.memory_space<vmem>>, %arg19: memref<32x4xf32, #tpu.memory_space<vmem>>, %arg20: memref<4x32xf32, #tpu.memory_space<vmem>>, %arg21: memref<32x16xf32, #tpu.memory_space<vmem>>, %arg22: memref<3x16x32xf32, #tpu.memory_space<vmem>>, %arg23: memref<1x8xf32, #tpu.memory_space<vmem>>, %arg24: memref<1x8xf32, #tpu.memory_space<vmem>>, %arg25: memref<4x64xf32, #tpu.memory_space<vmem>>, %arg26: memref<1x64xf32, #tpu.memory_space<vmem>>, %arg27: memref<32x8xf32, #tpu.memory_space<vmem>>, %arg28: memref<8x32xf32, #tpu.memory_space<vmem>>, %arg29: memref<16x32xf32, #tpu.memory_space<vmem>>, %arg30: memref<16x32xf32, #tpu.memory_space<vmem>>, %arg31: memref<16x32xf32, #tpu.memory_space<vmem>>) attributes {dimension_semantics = [], scalar_prefetch = 0 : i64, scratch_operands = 0 : i64, tpu.core_type = #tpu.core_type<tc>} {
    %c0 = arith.constant 0 : index
    %c0_0 = arith.constant 0 : index
    %0 = vector.load %arg0[%c0, %c0_0] : memref<16x16xf32, #tpu.memory_space<vmem>>, vector<16x16xf32>
    %1 = vector.shape_cast %0 : vector<16x16xf32> to vector<1x16x16xf32>
    %cst = arith.constant dense<0.000000e+00> : vector<1xf32>
    %2 = vector.multi_reduction <add>, %1, %cst [1, 2] : vector<1x16x16xf32> to vector<1xf32>
    %3 = vector.shape_cast %2 : vector<1xf32> to vector<1x1x1xf32>
    %4 = vector.extract %3[0, 0, 0] : f32 from vector<1x1x1xf32>
    %5 = arith.mulf %0, %0 : vector<16x16xf32>
    %6 = vector.shape_cast %5 : vector<16x16xf32> to vector<1x16x16xf32>
    %cst_1 = arith.constant dense<0.000000e+00> : vector<1xf32>
    %7 = vector.multi_reduction <add>, %6, %cst_1 [1, 2] : vector<1x16x16xf32> to vector<1xf32>
    %8 = vector.shape_cast %7 : vector<1xf32> to vector<1x1x1xf32>
    %9 = vector.extract %8[0, 0, 0] : f32 from vector<1x1x1xf32>
    %cst_2 = arith.constant 2.560000e+02 : f32
    %10 = arith.divf %4, %cst_2 : f32
    %cst_3 = arith.constant 2.560000e+02 : f32
    %11 = arith.divf %9, %cst_3 : f32
    %12 = arith.mulf %10, %10 : f32
    %13 = arith.subf %11, %12 : f32
    %14 = vector.broadcast %10 : f32 to vector<16x16xf32>
    %15 = arith.subf %0, %14 : vector<16x16xf32>
    %cst_4 = arith.constant 9.99999974E-6 : f32
    %16 = arith.addf %13, %cst_4 : f32
    %17 = math.rsqrt %16 : f32
    %18 = vector.broadcast %17 : f32 to vector<16x16xf32>
    %19 = arith.mulf %15, %18 : vector<16x16xf32>
    %c0_5 = arith.constant 0 : index
    %c0_6 = arith.constant 0 : index
    %20 = memref.load %arg4[%c0_5, %c0_6] : memref<1x1xf32, #tpu.memory_space<smem>>
    %21 = vector.broadcast %20 : f32 to vector<16x16xf32>
    %22 = arith.mulf %19, %21 : vector<16x16xf32>
    %c0_7 = arith.constant 0 : index
    %c0_8 = arith.constant 0 : index
    %23 = memref.load %arg5[%c0_7, %c0_8] : memref<1x1xf32, #tpu.memory_space<smem>>
    %24 = vector.broadcast %23 : f32 to vector<16x16xf32>
    %25 = arith.addf %22, %24 : vector<16x16xf32>
    %c0_9 = arith.constant 0 : index
    %c0_10 = arith.constant 0 : index
    %26 = vector.load %arg1[%c0_9, %c0_10] : memref<16x4xf32, #tpu.memory_space<vmem>>, vector<16x4xf32>
    %c0_11 = arith.constant 0 : index
    %c0_12 = arith.constant 0 : index
    %27 = vector.load %arg2[%c0_11, %c0_12] : memref<16x16xf32, #tpu.memory_space<vmem>>, vector<16x16xf32>
    %c0_13 = arith.constant 0 : index
    %c0_14 = arith.constant 0 : index
    %28 = vector.load %arg3[%c0_13, %c0_14] : memref<16x16xf32, #tpu.memory_space<vmem>>, vector<16x16xf32>
    %cst_15 = arith.constant dense<0.000000e+00> : vector<16x16xf32>
    %29 = tpu.matmul %27, %25, %cst_15 {dimension_numbers = #tpu.dot_dimension_numbers<[1], [0], [0], [1], [0, 0, 1, 1], [], []>} : vector<16x16xf32>, vector<16x16xf32>, vector<16x16xf32> -> vector<16x16xf32>
    %cst_16 = arith.constant dense<0.000000e+00> : vector<16x16xf32>
    %30 = tpu.matmul %28, %25, %cst_16 {dimension_numbers = #tpu.dot_dimension_numbers<[1], [0], [0], [1], [0, 0, 1, 1], [], []>} : vector<16x16xf32>, vector<16x16xf32>, vector<16x16xf32> -> vector<16x16xf32>
    %c0_17 = arith.constant 0 : index
    %c0_18 = arith.constant 0 : index
    %c0_19 = arith.constant 0 : index
    %31 = vector.load %arg6[%c0_17, %c0_18, %c0_19] : memref<3x16x32xf32, #tpu.memory_space<vmem>>, vector<1x16x32xf32>
    %32 = vector.shape_cast %31 : vector<1x16x32xf32> to vector<16x32xf32>
    %cst_20 = arith.constant dense<0.000000e+00> : vector<16x32xf32>
    %33 = tpu.matmul %29, %32, %cst_20 {dimension_numbers = #tpu.dot_dimension_numbers<[1], [0], [0], [1], [0, 0, 1, 1], [], []>} : vector<16x16xf32>, vector<16x32xf32>, vector<16x32xf32> -> vector<16x32xf32>
    %c1 = arith.constant 1 : index
    %c0_21 = arith.constant 0 : index
    %c0_22 = arith.constant 0 : index
    %34 = vector.load %arg6[%c1, %c0_21, %c0_22] : memref<3x16x32xf32, #tpu.memory_space<vmem>>, vector<1x16x32xf32>
    %35 = vector.shape_cast %34 : vector<1x16x32xf32> to vector<16x32xf32>
    %cst_23 = arith.constant dense<0.000000e+00> : vector<16x32xf32>
    %36 = tpu.matmul %25, %35, %cst_23 {dimension_numbers = #tpu.dot_dimension_numbers<[1], [0], [0], [1], [0, 0, 1, 1], [], []>} : vector<16x16xf32>, vector<16x32xf32>, vector<16x32xf32> -> vector<16x32xf32>
    %37 = arith.addf %33, %36 : vector<16x32xf32>
    %c2 = arith.constant 2 : index
    %c0_24 = arith.constant 0 : index
    %c0_25 = arith.constant 0 : index
    %38 = vector.load %arg6[%c2, %c0_24, %c0_25] : memref<3x16x32xf32, #tpu.memory_space<vmem>>, vector<1x16x32xf32>
    %39 = vector.shape_cast %38 : vector<1x16x32xf32> to vector<16x32xf32>
    %cst_26 = arith.constant dense<0.000000e+00> : vector<16x32xf32>
    %40 = tpu.matmul %30, %39, %cst_26 {dimension_numbers = #tpu.dot_dimension_numbers<[1], [0], [0], [1], [0, 0, 1, 1], [], []>} : vector<16x16xf32>, vector<16x32xf32>, vector<16x32xf32> -> vector<16x32xf32>
    %41 = arith.addf %37, %40 : vector<16x32xf32>
    %cst_27 = arith.constant dense<0.000000e+00> : vector<32xf32>
    %42 = vector.multi_reduction <add>, %41, %cst_27 [0] : vector<16x32xf32> to vector<32xf32>
    %43 = vector.shape_cast %42 : vector<32xf32> to vector<1x32xf32>
    %44 = arith.mulf %41, %41 : vector<16x32xf32>
    %cst_28 = arith.constant dense<0.000000e+00> : vector<32xf32>
    %45 = vector.multi_reduction <add>, %44, %cst_28 [0] : vector<16x32xf32> to vector<32xf32>
    %46 = vector.shape_cast %45 : vector<32xf32> to vector<1x32xf32>
    %c0_29 = arith.constant 0 : index
    %c0_30 = arith.constant 0 : index
    %47 = vector.load %arg11[%c0_29, %c0_30] : memref<32x2xf32, #tpu.memory_space<vmem>>, vector<32x2xf32>
    %cst_31 = arith.constant dense<0.000000e+00> : vector<1x2xf32>
    %48 = tpu.matmul %43, %47, %cst_31 {dimension_numbers = #tpu.dot_dimension_numbers<[1], [0], [0], [1], [0, 0, 1, 1], [], []>} : vector<1x32xf32>, vector<32x2xf32>, vector<1x2xf32> -> vector<1x2xf32>
    %c0_32 = arith.constant 0 : index
    %c0_33 = arith.constant 0 : index
    %49 = vector.load %arg11[%c0_32, %c0_33] : memref<32x2xf32, #tpu.memory_space<vmem>>, vector<32x2xf32>
    %cst_34 = arith.constant dense<0.000000e+00> : vector<1x2xf32>
    %50 = tpu.matmul %46, %49, %cst_34 {dimension_numbers = #tpu.dot_dimension_numbers<[1], [0], [0], [1], [0, 0, 1, 1], [], []>} : vector<1x32xf32>, vector<32x2xf32>, vector<1x2xf32> -> vector<1x2xf32>
    %cst_35 = arith.constant 2.560000e+02 : f32
    %51 = vector.broadcast %cst_35 : f32 to vector<1x2xf32>
    %52 = arith.divf %48, %51 : vector<1x2xf32>
    %cst_36 = arith.constant 2.560000e+02 : f32
    %53 = vector.broadcast %cst_36 : f32 to vector<1x2xf32>
    %54 = arith.divf %50, %53 : vector<1x2xf32>
    %55 = arith.mulf %52, %52 : vector<1x2xf32>
    %56 = arith.subf %54, %55 : vector<1x2xf32>
    %c0_37 = arith.constant 0 : index
    %c0_38 = arith.constant 0 : index
    %57 = vector.load %arg7[%c0_37, %c0_38] : memref<1x2xf32, #tpu.memory_space<vmem>>, vector<1x2xf32>
    %cst_39 = arith.constant 9.99999974E-6 : f32
    %58 = vector.broadcast %cst_39 : f32 to vector<1x2xf32>
    %59 = arith.addf %56, %58 : vector<1x2xf32>
    %60 = math.rsqrt %59 : vector<1x2xf32>
    %61 = arith.mulf %57, %60 : vector<1x2xf32>
    %c0_40 = arith.constant 0 : index
    %c0_41 = arith.constant 0 : index
    %62 = vector.load %arg8[%c0_40, %c0_41] : memref<1x2xf32, #tpu.memory_space<vmem>>, vector<1x2xf32>
    %63 = arith.mulf %52, %61 : vector<1x2xf32>
    %64 = arith.subf %62, %63 : vector<1x2xf32>
    %c0_42 = arith.constant 0 : index
    %c0_43 = arith.constant 0 : index
    %65 = vector.load %arg12[%c0_42, %c0_43] : memref<2x32xf32, #tpu.memory_space<vmem>>, vector<2x32xf32>
    %cst_44 = arith.constant dense<0.000000e+00> : vector<1x32xf32>
    %66 = tpu.matmul %61, %65, %cst_44 {dimension_numbers = #tpu.dot_dimension_numbers<[1], [0], [0], [1], [0, 0, 1, 1], [], []>} : vector<1x2xf32>, vector<2x32xf32>, vector<1x32xf32> -> vector<1x32xf32>
    %c0_45 = arith.constant 0 : index
    %c0_46 = arith.constant 0 : index
    %67 = vector.load %arg12[%c0_45, %c0_46] : memref<2x32xf32, #tpu.memory_space<vmem>>, vector<2x32xf32>
    %cst_47 = arith.constant dense<0.000000e+00> : vector<1x32xf32>
    %68 = tpu.matmul %64, %67, %cst_47 {dimension_numbers = #tpu.dot_dimension_numbers<[1], [0], [0], [1], [0, 0, 1, 1], [], []>} : vector<1x2xf32>, vector<2x32xf32>, vector<1x32xf32> -> vector<1x32xf32>
    %69 = vector.broadcast %66 : vector<1x32xf32> to vector<16x32xf32>
    %70 = arith.mulf %41, %69 : vector<16x32xf32>
    %71 = vector.broadcast %68 : vector<1x32xf32> to vector<16x32xf32>
    %72 = arith.addf %70, %71 : vector<16x32xf32>
    %cst_48 = arith.constant 0.000000e+00 : f32
    %73 = vector.broadcast %cst_48 : f32 to vector<16x32xf32>
    %74 = arith.maximumf %72, %73 : vector<16x32xf32>
    %c0_49 = arith.constant 0 : index
    %c0_50 = arith.constant 0 : index
    %75 = vector.load %arg9[%c0_49, %c0_50] : memref<4x64xf32, #tpu.memory_space<vmem>>, vector<4x64xf32>
    %cst_51 = arith.constant dense<0.000000e+00> : vector<16x64xf32>
    %76 = tpu.matmul %26, %75, %cst_51 {dimension_numbers = #tpu.dot_dimension_numbers<[1], [0], [0], [1], [0, 0, 1, 1], [], []>} : vector<16x4xf32>, vector<4x64xf32>, vector<16x64xf32> -> vector<16x64xf32>
    %c0_52 = arith.constant 0 : index
    %c0_53 = arith.constant 0 : index
    %77 = vector.load %arg10[%c0_52, %c0_53] : memref<1x64xf32, #tpu.memory_space<vmem>>, vector<1x64xf32>
    %78 = vector.broadcast %77 : vector<1x64xf32> to vector<16x64xf32>
    %79 = arith.addf %76, %78 : vector<16x64xf32>
    %80 = vector.extract_strided_slice %79 {offsets = [0, 0], sizes = [16, 32], strides = [1, 1]} : vector<16x64xf32> to vector<16x32xf32>
    %81 = arith.mulf %74, %80 : vector<16x32xf32>
    %82 = vector.extract_strided_slice %79 {offsets = [0, 32], sizes = [16, 32], strides = [1, 1]} : vector<16x64xf32> to vector<16x32xf32>
    %83 = arith.addf %81, %82 : vector<16x32xf32>
    %c0_54 = arith.constant 0 : index
    %c0_55 = arith.constant 0 : index
    %84 = vector.load %arg29[%c0_54, %c0_55] : memref<16x32xf32, #tpu.memory_space<vmem>>, vector<16x32xf32>
    tpu.vector_store %arg29[%c0_54, %c0_55], %83 {strides = array<i32>} : memref<16x32xf32, #tpu.memory_space<vmem>>, vector<16x32xf32>,
    %c0_56 = arith.constant 0 : index
    %c0_57 = arith.constant 0 : index
    %85 = vector.load %arg13[%c0_56, %c0_57] : memref<32x16xf32, #tpu.memory_space<vmem>>, vector<32x16xf32>
    %cst_58 = arith.constant dense<0.000000e+00> : vector<16x16xf32>
    %86 = tpu.matmul %83, %85, %cst_58 {dimension_numbers = #tpu.dot_dimension_numbers<[1], [0], [0], [1], [0, 0, 1, 1], [], []>} : vector<16x32xf32>, vector<32x16xf32>, vector<16x16xf32> -> vector<16x16xf32>
    %cst_59 = arith.constant dense<0.000000e+00> : vector<16x16xf32>
    %87 = tpu.matmul %27, %86, %cst_59 {dimension_numbers = #tpu.dot_dimension_numbers<[1], [0], [0], [1], [0, 0, 1, 1], [], []>} : vector<16x16xf32>, vector<16x16xf32>, vector<16x16xf32> -> vector<16x16xf32>
    %cst_60 = arith.constant dense<0.000000e+00> : vector<16x16xf32>
    %88 = tpu.matmul %28, %86, %cst_60 {dimension_numbers = #tpu.dot_dimension_numbers<[1], [0], [0], [1], [0, 0, 1, 1], [], []>} : vector<16x16xf32>, vector<16x16xf32>, vector<16x16xf32> -> vector<16x16xf32>
    %c0_61 = arith.constant 0 : index
    %c0_62 = arith.constant 0 : index
    %c0_63 = arith.constant 0 : index
    %89 = vector.load %arg14[%c0_61, %c0_62, %c0_63] : memref<3x16x32xf32, #tpu.memory_space<vmem>>, vector<1x16x32xf32>
    %90 = vector.shape_cast %89 : vector<1x16x32xf32> to vector<16x32xf32>
    %cst_64 = arith.constant dense<0.000000e+00> : vector<16x32xf32>
    %91 = tpu.matmul %87, %90, %cst_64 {dimension_numbers = #tpu.dot_dimension_numbers<[1], [0], [0], [1], [0, 0, 1, 1], [], []>} : vector<16x16xf32>, vector<16x32xf32>, vector<16x32xf32> -> vector<16x32xf32>
    %c1_65 = arith.constant 1 : index
    %c0_66 = arith.constant 0 : index
    %c0_67 = arith.constant 0 : index
    %92 = vector.load %arg14[%c1_65, %c0_66, %c0_67] : memref<3x16x32xf32, #tpu.memory_space<vmem>>, vector<1x16x32xf32>
    %93 = vector.shape_cast %92 : vector<1x16x32xf32> to vector<16x32xf32>
    %cst_68 = arith.constant dense<0.000000e+00> : vector<16x32xf32>
    %94 = tpu.matmul %86, %93, %cst_68 {dimension_numbers = #tpu.dot_dimension_numbers<[1], [0], [0], [1], [0, 0, 1, 1], [], []>} : vector<16x16xf32>, vector<16x32xf32>, vector<16x32xf32> -> vector<16x32xf32>
    %95 = arith.addf %91, %94 : vector<16x32xf32>
    %c2_69 = arith.constant 2 : index
    %c0_70 = arith.constant 0 : index
    %c0_71 = arith.constant 0 : index
    %96 = vector.load %arg14[%c2_69, %c0_70, %c0_71] : memref<3x16x32xf32, #tpu.memory_space<vmem>>, vector<1x16x32xf32>
    %97 = vector.shape_cast %96 : vector<1x16x32xf32> to vector<16x32xf32>
    %cst_72 = arith.constant dense<0.000000e+00> : vector<16x32xf32>
    %98 = tpu.matmul %88, %97, %cst_72 {dimension_numbers = #tpu.dot_dimension_numbers<[1], [0], [0], [1], [0, 0, 1, 1], [], []>} : vector<16x16xf32>, vector<16x32xf32>, vector<16x32xf32> -> vector<16x32xf32>
    %99 = arith.addf %95, %98 : vector<16x32xf32>
    %cst_73 = arith.constant dense<0.000000e+00> : vector<32xf32>
    %100 = vector.multi_reduction <add>, %99, %cst_73 [0] : vector<16x32xf32> to vector<32xf32>
    %101 = vector.shape_cast %100 : vector<32xf32> to vector<1x32xf32>
    %102 = arith.mulf %99, %99 : vector<16x32xf32>
    %cst_74 = arith.constant dense<0.000000e+00> : vector<32xf32>
    %103 = vector.multi_reduction <add>, %102, %cst_74 [0] : vector<16x32xf32> to vector<32xf32>
    %104 = vector.shape_cast %103 : vector<32xf32> to vector<1x32xf32>
    %c0_75 = arith.constant 0 : index
    %c0_76 = arith.constant 0 : index
    %105 = vector.load %arg19[%c0_75, %c0_76] : memref<32x4xf32, #tpu.memory_space<vmem>>, vector<32x4xf32>
    %cst_77 = arith.constant dense<0.000000e+00> : vector<1x4xf32>
    %106 = tpu.matmul %101, %105, %cst_77 {dimension_numbers = #tpu.dot_dimension_numbers<[1], [0], [0], [1], [0, 0, 1, 1], [], []>} : vector<1x32xf32>, vector<32x4xf32>, vector<1x4xf32> -> vector<1x4xf32>
    %c0_78 = arith.constant 0 : index
    %c0_79 = arith.constant 0 : index
    %107 = vector.load %arg19[%c0_78, %c0_79] : memref<32x4xf32, #tpu.memory_space<vmem>>, vector<32x4xf32>
    %cst_80 = arith.constant dense<0.000000e+00> : vector<1x4xf32>
    %108 = tpu.matmul %104, %107, %cst_80 {dimension_numbers = #tpu.dot_dimension_numbers<[1], [0], [0], [1], [0, 0, 1, 1], [], []>} : vector<1x32xf32>, vector<32x4xf32>, vector<1x4xf32> -> vector<1x4xf32>
    %cst_81 = arith.constant 1.280000e+02 : f32
    %109 = vector.broadcast %cst_81 : f32 to vector<1x4xf32>
    %110 = arith.divf %106, %109 : vector<1x4xf32>
    %cst_82 = arith.constant 1.280000e+02 : f32
    %111 = vector.broadcast %cst_82 : f32 to vector<1x4xf32>
    %112 = arith.divf %108, %111 : vector<1x4xf32>
    %113 = arith.mulf %110, %110 : vector<1x4xf32>
    %114 = arith.subf %112, %113 : vector<1x4xf32>
    %c0_83 = arith.constant 0 : index
    %c0_84 = arith.constant 0 : index
    %115 = vector.load %arg15[%c0_83, %c0_84] : memref<1x4xf32, #tpu.memory_space<vmem>>, vector<1x4xf32>
    %cst_85 = arith.constant 9.99999974E-6 : f32
    %116 = vector.broadcast %cst_85 : f32 to vector<1x4xf32>
    %117 = arith.addf %114, %116 : vector<1x4xf32>
    %118 = math.rsqrt %117 : vector<1x4xf32>
    %119 = arith.mulf %115, %118 : vector<1x4xf32>
    %c0_86 = arith.constant 0 : index
    %c0_87 = arith.constant 0 : index
    %120 = vector.load %arg16[%c0_86, %c0_87] : memref<1x4xf32, #tpu.memory_space<vmem>>, vector<1x4xf32>
    %121 = arith.mulf %110, %119 : vector<1x4xf32>
    %122 = arith.subf %120, %121 : vector<1x4xf32>
    %c0_88 = arith.constant 0 : index
    %c0_89 = arith.constant 0 : index
    %123 = vector.load %arg20[%c0_88, %c0_89] : memref<4x32xf32, #tpu.memory_space<vmem>>, vector<4x32xf32>
    %cst_90 = arith.constant dense<0.000000e+00> : vector<1x32xf32>
    %124 = tpu.matmul %119, %123, %cst_90 {dimension_numbers = #tpu.dot_dimension_numbers<[1], [0], [0], [1], [0, 0, 1, 1], [], []>} : vector<1x4xf32>, vector<4x32xf32>, vector<1x32xf32> -> vector<1x32xf32>
    %c0_91 = arith.constant 0 : index
    %c0_92 = arith.constant 0 : index
    %125 = vector.load %arg20[%c0_91, %c0_92] : memref<4x32xf32, #tpu.memory_space<vmem>>, vector<4x32xf32>
    %cst_93 = arith.constant dense<0.000000e+00> : vector<1x32xf32>
    %126 = tpu.matmul %122, %125, %cst_93 {dimension_numbers = #tpu.dot_dimension_numbers<[1], [0], [0], [1], [0, 0, 1, 1], [], []>} : vector<1x4xf32>, vector<4x32xf32>, vector<1x32xf32> -> vector<1x32xf32>
    %127 = vector.broadcast %124 : vector<1x32xf32> to vector<16x32xf32>
    %128 = arith.mulf %99, %127 : vector<16x32xf32>
    %129 = vector.broadcast %126 : vector<1x32xf32> to vector<16x32xf32>
    %130 = arith.addf %128, %129 : vector<16x32xf32>
    %cst_94 = arith.constant 0.000000e+00 : f32
    %131 = vector.broadcast %cst_94 : f32 to vector<16x32xf32>
    %132 = arith.maximumf %130, %131 : vector<16x32xf32>
    %c0_95 = arith.constant 0 : index
    %c0_96 = arith.constant 0 : index
    %133 = vector.load %arg17[%c0_95, %c0_96] : memref<4x64xf32, #tpu.memory_space<vmem>>, vector<4x64xf32>
    %cst_97 = arith.constant dense<0.000000e+00> : vector<16x64xf32>
    %134 = tpu.matmul %26, %133, %cst_97 {dimension_numbers = #tpu.dot_dimension_numbers<[1], [0], [0], [1], [0, 0, 1, 1], [], []>} : vector<16x4xf32>, vector<4x64xf32>, vector<16x64xf32> -> vector<16x64xf32>
    %c0_98 = arith.constant 0 : index
    %c0_99 = arith.constant 0 : index
    %135 = vector.load %arg18[%c0_98, %c0_99] : memref<1x64xf32, #tpu.memory_space<vmem>>, vector<1x64xf32>
    %136 = vector.broadcast %135 : vector<1x64xf32> to vector<16x64xf32>
    %137 = arith.addf %134, %136 : vector<16x64xf32>
    %138 = vector.extract_strided_slice %137 {offsets = [0, 0], sizes = [16, 32], strides = [1, 1]} : vector<16x64xf32> to vector<16x32xf32>
    %139 = arith.mulf %132, %138 : vector<16x32xf32>
    %140 = vector.extract_strided_slice %137 {offsets = [0, 32], sizes = [16, 32], strides = [1, 1]} : vector<16x64xf32> to vector<16x32xf32>
    %141 = arith.addf %139, %140 : vector<16x32xf32>
    %c0_100 = arith.constant 0 : index
    %c0_101 = arith.constant 0 : index
    %142 = vector.load %arg30[%c0_100, %c0_101] : memref<16x32xf32, #tpu.memory_space<vmem>>, vector<16x32xf32>
    tpu.vector_store %arg30[%c0_100, %c0_101], %141 {strides = array<i32>} : memref<16x32xf32, #tpu.memory_space<vmem>>, vector<16x32xf32>,
    %c0_102 = arith.constant 0 : index
    %c0_103 = arith.constant 0 : index
    %143 = vector.load %arg21[%c0_102, %c0_103] : memref<32x16xf32, #tpu.memory_space<vmem>>, vector<32x16xf32>
    %cst_104 = arith.constant dense<0.000000e+00> : vector<16x16xf32>
    %144 = tpu.matmul %141, %143, %cst_104 {dimension_numbers = #tpu.dot_dimension_numbers<[1], [0], [0], [1], [0, 0, 1, 1], [], []>} : vector<16x32xf32>, vector<32x16xf32>, vector<16x16xf32> -> vector<16x16xf32>
    %cst_105 = arith.constant dense<0.000000e+00> : vector<16x16xf32>
    %145 = tpu.matmul %27, %144, %cst_105 {dimension_numbers = #tpu.dot_dimension_numbers<[1], [0], [0], [1], [0, 0, 1, 1], [], []>} : vector<16x16xf32>, vector<16x16xf32>, vector<16x16xf32> -> vector<16x16xf32>
    %cst_106 = arith.constant dense<0.000000e+00> : vector<16x16xf32>
    %146 = tpu.matmul %28, %144, %cst_106 {dimension_numbers = #tpu.dot_dimension_numbers<[1], [0], [0], [1], [0, 0, 1, 1], [], []>} : vector<16x16xf32>, vector<16x16xf32>, vector<16x16xf32> -> vector<16x16xf32>
    %c0_107 = arith.constant 0 : index
    %c0_108 = arith.constant 0 : index
    %c0_109 = arith.constant 0 : index
    %147 = vector.load %arg22[%c0_107, %c0_108, %c0_109] : memref<3x16x32xf32, #tpu.memory_space<vmem>>, vector<1x16x32xf32>
    %148 = vector.shape_cast %147 : vector<1x16x32xf32> to vector<16x32xf32>
    %cst_110 = arith.constant dense<0.000000e+00> : vector<16x32xf32>
    %149 = tpu.matmul %145, %148, %cst_110 {dimension_numbers = #tpu.dot_dimension_numbers<[1], [0], [0], [1], [0, 0, 1, 1], [], []>} : vector<16x16xf32>, vector<16x32xf32>, vector<16x32xf32> -> vector<16x32xf32>
    %c1_111 = arith.constant 1 : index
    %c0_112 = arith.constant 0 : index
    %c0_113 = arith.constant 0 : index
    %150 = vector.load %arg22[%c1_111, %c0_112, %c0_113] : memref<3x16x32xf32, #tpu.memory_space<vmem>>, vector<1x16x32xf32>
    %151 = vector.shape_cast %150 : vector<1x16x32xf32> to vector<16x32xf32>
    %cst_114 = arith.constant dense<0.000000e+00> : vector<16x32xf32>
    %152 = tpu.matmul %144, %151, %cst_114 {dimension_numbers = #tpu.dot_dimension_numbers<[1], [0], [0], [1], [0, 0, 1, 1], [], []>} : vector<16x16xf32>, vector<16x32xf32>, vector<16x32xf32> -> vector<16x32xf32>
    %153 = arith.addf %149, %152 : vector<16x32xf32>
    %c2_115 = arith.constant 2 : index
    %c0_116 = arith.constant 0 : index
    %c0_117 = arith.constant 0 : index
    %154 = vector.load %arg22[%c2_115, %c0_116, %c0_117] : memref<3x16x32xf32, #tpu.memory_space<vmem>>, vector<1x16x32xf32>
    %155 = vector.shape_cast %154 : vector<1x16x32xf32> to vector<16x32xf32>
    %cst_118 = arith.constant dense<0.000000e+00> : vector<16x32xf32>
    %156 = tpu.matmul %146, %155, %cst_118 {dimension_numbers = #tpu.dot_dimension_numbers<[1], [0], [0], [1], [0, 0, 1, 1], [], []>} : vector<16x16xf32>, vector<16x32xf32>, vector<16x32xf32> -> vector<16x32xf32>
    %157 = arith.addf %153, %156 : vector<16x32xf32>
    %cst_119 = arith.constant dense<0.000000e+00> : vector<32xf32>
    %158 = vector.multi_reduction <add>, %157, %cst_119 [0] : vector<16x32xf32> to vector<32xf32>
    %159 = vector.shape_cast %158 : vector<32xf32> to vector<1x32xf32>
    %160 = arith.mulf %157, %157 : vector<16x32xf32>
    %cst_120 = arith.constant dense<0.000000e+00> : vector<32xf32>
    %161 = vector.multi_reduction <add>, %160, %cst_120 [0] : vector<16x32xf32> to vector<32xf32>
    %162 = vector.shape_cast %161 : vector<32xf32> to vector<1x32xf32>
    %c0_121 = arith.constant 0 : index
    %c0_122 = arith.constant 0 : index
    %163 = vector.load %arg27[%c0_121, %c0_122] : memref<32x8xf32, #tpu.memory_space<vmem>>, vector<32x8xf32>
    %cst_123 = arith.constant dense<0.000000e+00> : vector<1x8xf32>
    %164 = tpu.matmul %159, %163, %cst_123 {dimension_numbers = #tpu.dot_dimension_numbers<[1], [0], [0], [1], [0, 0, 1, 1], [], []>} : vector<1x32xf32>, vector<32x8xf32>, vector<1x8xf32> -> vector<1x8xf32>
    %c0_124 = arith.constant 0 : index
    %c0_125 = arith.constant 0 : index
    %165 = vector.load %arg27[%c0_124, %c0_125] : memref<32x8xf32, #tpu.memory_space<vmem>>, vector<32x8xf32>
    %cst_126 = arith.constant dense<0.000000e+00> : vector<1x8xf32>
    %166 = tpu.matmul %162, %165, %cst_126 {dimension_numbers = #tpu.dot_dimension_numbers<[1], [0], [0], [1], [0, 0, 1, 1], [], []>} : vector<1x32xf32>, vector<32x8xf32>, vector<1x8xf32> -> vector<1x8xf32>
    %cst_127 = arith.constant 6.400000e+01 : f32
    %167 = vector.broadcast %cst_127 : f32 to vector<1x8xf32>
    %168 = arith.divf %164, %167 : vector<1x8xf32>
    %cst_128 = arith.constant 6.400000e+01 : f32
    %169 = vector.broadcast %cst_128 : f32 to vector<1x8xf32>
    %170 = arith.divf %166, %169 : vector<1x8xf32>
    %171 = arith.mulf %168, %168 : vector<1x8xf32>
    %172 = arith.subf %170, %171 : vector<1x8xf32>
    %c0_129 = arith.constant 0 : index
    %c0_130 = arith.constant 0 : index
    %173 = vector.load %arg23[%c0_129, %c0_130] : memref<1x8xf32, #tpu.memory_space<vmem>>, vector<1x8xf32>
    %cst_131 = arith.constant 9.99999974E-6 : f32
    %174 = vector.broadcast %cst_131 : f32 to vector<1x8xf32>
    %175 = arith.addf %172, %174 : vector<1x8xf32>
    %176 = math.rsqrt %175 : vector<1x8xf32>
    %177 = arith.mulf %173, %176 : vector<1x8xf32>
    %c0_132 = arith.constant 0 : index
    %c0_133 = arith.constant 0 : index
    %178 = vector.load %arg24[%c0_132, %c0_133] : memref<1x8xf32, #tpu.memory_space<vmem>>, vector<1x8xf32>
    %179 = arith.mulf %168, %177 : vector<1x8xf32>
    %180 = arith.subf %178, %179 : vector<1x8xf32>
    %c0_134 = arith.constant 0 : index
    %c0_135 = arith.constant 0 : index
    %181 = vector.load %arg28[%c0_134, %c0_135] : memref<8x32xf32, #tpu.memory_space<vmem>>, vector<8x32xf32>
    %cst_136 = arith.constant dense<0.000000e+00> : vector<1x32xf32>
    %182 = tpu.matmul %177, %181, %cst_136 {dimension_numbers = #tpu.dot_dimension_numbers<[1], [0], [0], [1], [0, 0, 1, 1], [], []>} : vector<1x8xf32>, vector<8x32xf32>, vector<1x32xf32> -> vector<1x32xf32>
    %c0_137 = arith.constant 0 : index
    %c0_138 = arith.constant 0 : index
    %183 = vector.load %arg28[%c0_137, %c0_138] : memref<8x32xf32, #tpu.memory_space<vmem>>, vector<8x32xf32>
    %cst_139 = arith.constant dense<0.000000e+00> : vector<1x32xf32>
    %184 = tpu.matmul %180, %183, %cst_139 {dimension_numbers = #tpu.dot_dimension_numbers<[1], [0], [0], [1], [0, 0, 1, 1], [], []>} : vector<1x8xf32>, vector<8x32xf32>, vector<1x32xf32> -> vector<1x32xf32>
    %185 = vector.broadcast %182 : vector<1x32xf32> to vector<16x32xf32>
    %186 = arith.mulf %157, %185 : vector<16x32xf32>
    %187 = vector.broadcast %184 : vector<1x32xf32> to vector<16x32xf32>
    %188 = arith.addf %186, %187 : vector<16x32xf32>
    %cst_140 = arith.constant 0.000000e+00 : f32
    %189 = vector.broadcast %cst_140 : f32 to vector<16x32xf32>
    %190 = arith.maximumf %188, %189 : vector<16x32xf32>
    %c0_141 = arith.constant 0 : index
    %c0_142 = arith.constant 0 : index
    %191 = vector.load %arg25[%c0_141, %c0_142] : memref<4x64xf32, #tpu.memory_space<vmem>>, vector<4x64xf32>
    %cst_143 = arith.constant dense<0.000000e+00> : vector<16x64xf32>
    %192 = tpu.matmul %26, %191, %cst_143 {dimension_numbers = #tpu.dot_dimension_numbers<[1], [0], [0], [1], [0, 0, 1, 1], [], []>} : vector<16x4xf32>, vector<4x64xf32>, vector<16x64xf32> -> vector<16x64xf32>
    %c0_144 = arith.constant 0 : index
    %c0_145 = arith.constant 0 : index
    %193 = vector.load %arg26[%c0_144, %c0_145] : memref<1x64xf32, #tpu.memory_space<vmem>>, vector<1x64xf32>
    %194 = vector.broadcast %193 : vector<1x64xf32> to vector<16x64xf32>
    %195 = arith.addf %192, %194 : vector<16x64xf32>
    %196 = vector.extract_strided_slice %195 {offsets = [0, 0], sizes = [16, 32], strides = [1, 1]} : vector<16x64xf32> to vector<16x32xf32>
    %197 = arith.mulf %190, %196 : vector<16x32xf32>
    %198 = vector.extract_strided_slice %195 {offsets = [0, 32], sizes = [16, 32], strides = [1, 1]} : vector<16x64xf32> to vector<16x32xf32>
    %199 = arith.addf %197, %198 : vector<16x32xf32>
    %c0_146 = arith.constant 0 : index
    %c0_147 = arith.constant 0 : index
    %200 = vector.load %arg31[%c0_146, %c0_147] : memref<16x32xf32, #tpu.memory_space<vmem>>, vector<16x32xf32>
    tpu.vector_store %arg31[%c0_146, %c0_147], %199 {strides = array<i32>} : memref<16x32xf32, #tpu.memory_space<vmem>>, vector<16x32xf32>,
    return
  }
}

</mosaic_0001>

<bundles_post_ra>
// kernel: tpu_custom_call.1
= control target key start
LH: loop header
LB: loop body
LE: loop exit
PB: predicated region body
PF: predicated region fallthrough
CT: control target
= control target key end

     0   :  { %s2033_s6 = smov 1   ;;  %s2034_s10 = smov 2   ;;  %s2527_s0 = inlined_call_operand.smem [shape: u32[32], index: -1, kind: input, shape index: {}] }
   0x1   :  { %s2091_s5 = sld [smem:[%s2527_s0]]   ;;  %s2035_s14 = smov 3  }
   0x2   :  { %s2096_s9 = sld [smem:[%s2527_s0 + %s2033_s6]]   ;;  %s2036_s18 = smov 4  }
   0x3   :  { %s2101_s13 = sld [smem:[%s2527_s0 + %s2034_s10]]   ;;  %s2037_s22 = smov 5  }
   0x4   :  { %s2106_s17 = sld [smem:[%s2527_s0 + %s2035_s14]]   ;;  %s2038_s26 = smov 6  }
   0x5   :  { %s2111_s21 = sld [smem:[%s2527_s0 + %s2036_s18]]   ;;  %s2039_s30 = smov 7  }
   0x6   :  { %s2116_s25 = sld [smem:[%s2527_s0 + %s2037_s22]]   ;;  %s2040_s4 = smov 8  }
   0x7   :  { %s2121_s29 = sld [smem:[%s2527_s0 + %s2038_s26]]   ;;  %s2041_s10 = smov 9  }
   0x8   :  { %2537 = sst [smem:[#allocation33_spill]] %s2096_s9  ;;  %s2042_s15 = smov 10  }
   0x9   :  { %2538 = sst [smem:[#allocation34_spill]] %s2101_s13  ;;  %s2043_s20 = smov 11  }
   0xa   :  { %s2126_s3 = sld [smem:[%s2527_s0 + %s2039_s30]]   ;;  %s2044_s26 = smov 12  }
   0xb   :  { %s2131_s8 = sld [smem:[%s2527_s0 + %s2040_s4]]   ;;  %s2045_s1 = smov 13  }
   0xc   :  { %s2136_s14 = sld [smem:[%s2527_s0 + %s2041_s10]]   ;;  %s2046_s7 = smov 14  }
   0xd   :  { %s2141_s19 = sld [smem:[%s2527_s0 + %s2042_s15]]   ;;  %s2047_s15 = smov 15  }
   0xe   :  { %s2146_s24 = sld [smem:[%s2527_s0 + %s2043_s20]]   ;;  %s2048_s22 = smov 16  }
   0xf   :  { %s2151_s30 = sld [smem:[%s2527_s0 + %s2044_s26]]   ;;  %s2049_s28 = smov 17  }
  0x10   :  { %s2156_s6 = sld [smem:[%s2527_s0 + %s2045_s1]]  }
  0x11   :  { %s2161_s12 = sld [smem:[%s2527_s0 + %s2046_s7]]   ;;  %s2050_s7 = smov 18  }
  0x12   :  { %2539 = sst [smem:[#allocation35_spill]] %s2136_s14 }
  0x13   :  { %s2166_s20 = sld [smem:[%s2527_s0 + %s2047_s15]]   ;;  %s2051_s15 = smov 19  }
  0x14   :  { %2540 = sst [smem:[#allocation36_spill]] %s2146_s24 }
  0x15   :  { %s2171_s27 = sld [smem:[%s2527_s0 + %s2048_s22]]   ;;  %s2052_s22 = smov 20  }
  0x16   :  { %2541 = sst [smem:[#allocation37_spill]] %s2156_s6 }
  0x17   :  { %2542 = sst [smem:[#allocation38_spill]] %s2161_s12 }
  0x18   :  { %s2176_s4 = sld [smem:[%s2527_s0 + %s2049_s28]]   ;;  %s2053_s28 = smov 21  }
  0x19   :  { %s2181_s12 = sld [smem:[%s2527_s0 + %s2050_s7]]   ;;  %s2054_s7 = smov 22  }
  0x1a   :  { %s2186_s6 = sld [smem:[%s2527_s0 + %s2051_s15]]   ;;  %s2055_s15 = smov 23  }
  0x1b   :  { %s2191_s9 = sld [smem:[%s2527_s0 + %s2052_s22]]   ;;  %s2056_s22 = smov 24  }
  0x1c   :  { %s2201_s14 = sld [smem:[%s2527_s0 + %s2054_s7]]   ;;  %s2058_s7 = smov 26  }
  0x1e   :  { %2543 = sst [smem:[#allocation39_spill]] %s2176_s4 }
  0x1f   :  { %s2196_s4 = sld [smem:[%s2527_s0 + %s2053_s28]]   ;;  %s2057_s28 = smov 25  }
  0x20   :  { %2544 = sst [smem:[#allocation40_spill]] %s2186_s6 }
  0x21   :  { %2545 = sst [smem:[#allocation41_spill]] %s2191_s9 }
  0x22   :  { %2547 = sst [smem:[#allocation43_spill]] %s2201_s14 }
  0x23   :  { %s2206_s6 = sld [smem:[%s2527_s0 + %s2055_s15]]   ;;  %s2059_s15 = smov 27  }
  0x24   :  { %s2211_s9 = sld [smem:[%s2527_s0 + %s2056_s22]]   ;;  %s2060_s22 = smov 28  }
  0x25   :  { %2546 = sst [smem:[#allocation42_spill]] %s2196_s4 }
  0x26   :  { %s2216_s4 = sld [smem:[%s2527_s0 + %s2057_s28]]   ;;  %s2061_s28 = smov 29  }
  0x27   :  { %s2221_s14 = sld [smem:[%s2527_s0 + %s2058_s7]]   ;;  %s2062_s7 = smov 30  }
  0x28   :  { %s2226_s24 = sld [smem:[%s2527_s0 + %s2059_s15]]   ;;  %s2063_s15 = smov 31  }
  0x29   :  { %s2231_s13 = sld [smem:[%s2527_s0 + %s2060_s22]]  }
  0x2c   :  { %2548 = sst [smem:[#allocation44_spill]] %s2216_s4 }
  0x2d   :  { %2549 = sst [smem:[#allocation45_spill]] %s2221_s14 }
  0x2e   :  { %2550 = sst [smem:[#allocation46_spill]] %s2226_s24 }
  0x2f   :  { %s2236_s4 = sld [smem:[%s2527_s0 + %s2061_s28]]  }
  0x30   :  { %s2241_s14 = sld [smem:[%s2527_s0 + %s2062_s7]]  }
  0x31   :  { %s2246_s24 = sld [smem:[%s2527_s0 + %s2063_s15]]  }
  0x32   :  { %71 = vsyncpa [#allocation5], 0 }
  0x33   :  { %72 = vsyncpa [#allocation8], 0 }
  0x34   :  { %73 = vsyncpa [#allocation11], 0 }
  0x35   :  { %74 = vsyncpa [#allocation14], 0 }
  0x36   :  { %75 = vsyncpa [#allocation17], 0 }
  0x37   :  { %76 = vsyncpa [#allocation20], 0 }
  0x38   :  { %77 = vsyncpa [#allocation6], 0  ;;  %s109_s22 = sshll.u32 %s2126_s3, 4  ;;  %s110_s22 = int_to_ptr.hbm [resolvable:$true] %s109_s22 }
  0x39   :  { %78 = vsyncpa [#allocation23], 0  ;;  %s2064_s23 = smov [#allocation7]   ;;  %s133_s28 = sshll.u32 %s2141_s19, 4  ;;  %s134_s28 = int_to_ptr.hbm [resolvable:$true] %s133_s28 }
  0x3a   :  { %s111_s26 = sshll.u32 %s2064_s23, 4  ;;  %s1705_s0 = sshra.s32 %s110_s22, 4  ;;  %s112_s26 = int_to_ptr.vmem [resolvable:$true] %s111_s26  ;;  %s1706_s0 = int_to_ptr.hbm [resolvable:$true] %s1705_s0 }
  0x3b   :  { %s1707_s1 = scalar_lea.hbm %s1706_s0, 1  ;;  %s1709_s2 = scalar_lea.hbm %s2126_s3, 1 }
  0x3c   :  { %p1708_p0 = scmp.ne.s32.totalorder %s1706_s0, %s1707_s1  ;;  %p1710_p1 = scmp.lt.s32.totalorder %s1706_s0, %s2126_s3 }
  0x3d   :  { %p1711_p2 = scmp.lt.s32.totalorder %s1709_s2, %s1707_s1 }
  0x3f   :  { %p1712_p3 = por %p1711_p2, %p1710_p1 }
  0x41   :  { %p1713_p4 = pnand %p1712_p3, %p1708_p0 }
  0x43   :  { %1716 = shalt.err (!%p1713_p4)
}
  0x44   :  { %114 = dma.hbm_to_vmem [thread:$0]  %s110_s22, 16, %s112_s26, [#allocation8]  }
  0x45   :  { %s2065_s7 = smov [#allocation10]   ;;  %s161_s11 = sshll.u32 %s2166_s20, 4  ;;  %s162_s11 = int_to_ptr.hbm [resolvable:$true] %s161_s11 }
  0x46   :  { %s135_s10 = sshll.u32 %s2065_s7, 4  ;;  %s1729_s15 = sshra.s32 %s134_s28, 4  ;;  %s136_s10 = int_to_ptr.vmem [resolvable:$true] %s135_s10  ;;  %s1730_s15 = int_to_ptr.hbm [resolvable:$true] %s1729_s15 }
  0x47   :  { %s1731_s16 = scalar_lea.hbm %s1730_s15, 1  ;;  %s1733_s18 = scalar_lea.hbm %s2141_s19, 1 }
  0x48   :  { %p1732_p5 = scmp.ne.s32.totalorder %s1730_s15, %s1731_s16  ;;  %p1734_p6 = scmp.lt.s32.totalorder %s1730_s15, %s2141_s19 }
  0x49   :  { %p1735_p7 = scmp.lt.s32.totalorder %s1733_s18, %s1731_s16 }
  0x4b   :  { %p1736_p8 = por %p1735_p7, %p1734_p6 }
  0x4d   :  { %p1737_p9 = pnand %p1736_p8, %p1732_p5 }
  0x4f   :  { %1740 = shalt.err (!%p1737_p9)
}
  0x50   :  { %138 = dma.hbm_to_vmem [thread:$0]  %s134_s28, 16, %s136_s10, [#allocation11]  }
  0x51   :  { %s185_s3 = sshll.u32 %s2181_s12, 4  ;;  %s2066_s22 = smov [#allocation13]   ;;  %s186_s3 = int_to_ptr.hbm [resolvable:$true] %s185_s3 }
  0x52   :  { %s163_s23 = sshll.u32 %s2066_s22, 4  ;;  %s1753_s26 = sshra.s32 %s162_s11, 4  ;;  %s164_s23 = int_to_ptr.vmem [resolvable:$true] %s163_s23  ;;  %s1754_s26 = int_to_ptr.hbm [resolvable:$true] %s1753_s26 }
  0x53   :  { %s1755_s0 = scalar_lea.hbm %s1754_s26, 1  ;;  %s1757_s1 = scalar_lea.hbm %s2166_s20, 1 }
  0x54   :  { %p1756_p10 = scmp.ne.s32.totalorder %s1754_s26, %s1755_s0  ;;  %p1758_p11 = scmp.lt.s32.totalorder %s1754_s26, %s2166_s20 }
  0x55   :  { %p1759_p12 = scmp.lt.s32.totalorder %s1757_s1, %s1755_s0 }
  0x57   :  { %p1760_p13 = por %p1759_p12, %p1758_p11 }
  0x59   :  { %p1761_p0 = pnand %p1760_p13, %p1756_p10 }
  0x5b   :  { %1764 = shalt.err (!%p1761_p0)
}
  0x5c   :  { %166 = dma.hbm_to_vmem [thread:$0]  %s162_s11, 16, %s164_s23, [#allocation14]  }
  0x5d   :  { %s2067_s19 = smov [#allocation16]   ;;  %s89_s2 = sshll.u32 %s2106_s17, 4  ;;  %s2259_s2 = int_to_ptr.hbm [resolvable:$true] %s89_s2 }
  0x5e   :  { %s187_s28 = sshll.u32 %s2067_s19, 4  ;;  %s1777_s7 = sshra.s32 %s186_s3, 4  ;;  %s188_s28 = int_to_ptr.vmem [resolvable:$true] %s187_s28  ;;  %s1778_s7 = int_to_ptr.hbm [resolvable:$true] %s1777_s7 }
  0x5f   :  { %s1779_s10 = scalar_lea.hbm %s1778_s7, 1  ;;  %s1781_s15 = scalar_lea.hbm %s2181_s12, 1 }
  0x60   :  { %p1780_p1 = scmp.ne.s32.totalorder %s1778_s7, %s1779_s10  ;;  %p1782_p2 = scmp.lt.s32.totalorder %s1778_s7, %s2181_s12 }
  0x61   :  { %p1783_p3 = scmp.lt.s32.totalorder %s1781_s15, %s1779_s10 }
  0x63   :  { %p1784_p4 = por %p1783_p3, %p1782_p2 }
  0x65   :  { %p1785_p5 = pnand %p1784_p4, %p1780_p1 }
  0x67   :  { %1788 = shalt.err (!%p1785_p5)
}
  0x68   :  { %190 = dma.hbm_to_vmem [thread:$0]  %s186_s3, 16, %s188_s28, [#allocation17]  }
  0x69   :  { %s2068_s20 = smov [#allocation4]   ;;  %s120_s16 = sshll.u32 %s2131_s8, 4  ;;  %s121_s16 = int_to_ptr.hbm [resolvable:$true] %s120_s16 }
  0x6a   :  { %s91_s11 = sshll.u32 %s2068_s20, 4  ;;  %s1801_s18 = sshra.s32 %s2259_s2, 4  ;;  %s92_s11 = int_to_ptr.vmem [resolvable:$true] %s91_s11  ;;  %s1802_s18 = int_to_ptr.hbm [resolvable:$true] %s1801_s18 }
  0x6b   :  { %s1803_s22 = scalar_lea.hbm %s1802_s18, 16  ;;  %s1805_s23 = scalar_lea.hbm %s2106_s17, 16 }
  0x6c   :  { %p1804_p6 = scmp.ne.s32.totalorder %s1802_s18, %s1803_s22  ;;  %p1806_p7 = scmp.lt.s32.totalorder %s1802_s18, %s2106_s17 }
  0x6d   :  { %p1807_p8 = scmp.lt.s32.totalorder %s1805_s23, %s1803_s22 }
  0x6f   :  { %p1808_p9 = por %p1807_p8, %p1806_p7 }
  0x71   :  { %p1809_p10 = pnand %p1808_p9, %p1804_p6 }
  0x73   :  { %1812 = shalt.err (!%p1809_p10)
}
  0x74   :  { %s2069_s12 = smov 128   ;;  %s2070_s3 = smov 8  }
  0x75   :  { %97 = dma.hbm_to_vmem [thread:$0]  %s2259_s2, 256, %s92_s11, [#allocation5], %s2069_s12, %s2069_s12, %s2070_s3  }
  0x76   :  { %s2071_s26 = smov [#allocation9]   ;;  %s146_s1 = sshll.u32 %s2151_s30, 4  ;;  %s147_s1 = int_to_ptr.hbm [resolvable:$true] %s146_s1 }
  0x77   :  { %s122_s0 = sshll.u32 %s2071_s26, 4  ;;  %s1825_s17 = sshra.s32 %s121_s16, 4  ;;  %s123_s0 = int_to_ptr.vmem [resolvable:$true] %s122_s0  ;;  %s1826_s17 = int_to_ptr.hbm [resolvable:$true] %s1825_s17 }
  0x78   :  { %s1827_s19 = scalar_lea.hbm %s1826_s17, 1  ;;  %s1829_s28 = scalar_lea.hbm %s2131_s8, 1 }
  0x79   :  { %p1828_p11 = scmp.ne.s32.totalorder %s1826_s17, %s1827_s19  ;;  %p1830_p12 = scmp.lt.s32.totalorder %s1826_s17, %s2131_s8 }
  0x7a   :  { %p1831_p13 = scmp.lt.s32.totalorder %s1829_s28, %s1827_s19 }
  0x7c   :  { %p1832_p0 = por %p1831_p13, %p1830_p12 }
  0x7e   :  { %p1833_p1 = pnand %p1832_p0, %p1828_p11 }
  0x80   :  { %1836 = shalt.err (!%p1833_p1)
}
  0x81   :  { %125 = dma.hbm_to_vmem [thread:$0]  %s121_s16, 16, %s123_s0, [#allocation8]  }
  0x82   :  { %s172_s2 = sshll.u32 %s2171_s27, 4  ;;  %s2072_s7 = smov [#allocation12]   ;;  %s173_s2 = int_to_ptr.hbm [resolvable:$true] %s172_s2 }
  0x83   :  { %s148_s10 = sshll.u32 %s2072_s7, 4  ;;  %s1849_s15 = sshra.s32 %s147_s1, 4  ;;  %s149_s10 = int_to_ptr.vmem [resolvable:$true] %s148_s10  ;;  %s1850_s15 = int_to_ptr.hbm [resolvable:$true] %s1849_s15 }
  0x84   :  { %s1851_s20 = scalar_lea.hbm %s1850_s15, 2  ;;  %s1853_s11 = scalar_lea.hbm %s2151_s30, 2 }
  0x85   :  { %p1852_p2 = scmp.ne.s32.totalorder %s1850_s15, %s1851_s20  ;;  %p1854_p3 = scmp.lt.s32.totalorder %s1850_s15, %s2151_s30 }
  0x86   :  { %p1855_p4 = scmp.lt.s32.totalorder %s1853_s11, %s1851_s20 }
  0x88   :  { %p1856_p5 = por %p1855_p4, %p1854_p3 }
  0x8a   :  { %p1857_p6 = pnand %p1856_p5, %p1852_p2 }
  0x8c   :  { %1860 = shalt.err (!%p1857_p6)
}
  0x8d   :  { %151 = dma.hbm_to_vmem [thread:$0]  %s147_s1, 32, %s149_s10, [#allocation11]  }
  0x8e   :  { %s2073_s8 = smov [#allocation15]   ;;  %s204_s18 = sshll.u32 %s2206_s6, 4  ;;  %s205_s18 = int_to_ptr.hbm [resolvable:$true] %s204_s18 }
  0x8f   :  { %s174_s16 = sshll.u32 %s2073_s8, 4  ;;  %s1873_s22 = sshra.s32 %s173_s2, 4  ;;  %s175_s16 = int_to_ptr.vmem [resolvable:$true] %s174_s16  ;;  %s1874_s22 = int_to_ptr.hbm [resolvable:$true] %s1873_s22 }
  0x90   :  { %s1875_s23 = scalar_lea.hbm %s1874_s22, 1  ;;  %s1877_s26 = scalar_lea.hbm %s2171_s27, 1 }
  0x91   :  { %p1876_p7 = scmp.ne.s32.totalorder %s1874_s22, %s1875_s23  ;;  %p1878_p8 = scmp.lt.s32.totalorder %s1874_s22, %s2171_s27 }
  0x92   :  { %p1879_p9 = scmp.lt.s32.totalorder %s1877_s26, %s1875_s23 }
  0x94   :  { %p1880_p10 = por %p1879_p9, %p1878_p8 }
  0x96   :  { %p1881_p11 = pnand %p1880_p10, %p1876_p7 }
  0x98   :  { %1884 = shalt.err (!%p1881_p11)
}
  0x99   :  { %177 = dma.hbm_to_vmem [thread:$0]  %s173_s2, 16, %s175_s16, [#allocation14]  }
  0x9a   :  { %s215_s30 = sshll.u32 %s2211_s9, 4  ;;  %s2074_s0 = smov [#allocation18]   ;;  %s216_s30 = int_to_ptr.hbm [resolvable:$true] %s215_s30 }
  0x9b   :  { %s206_s1 = sshll.u32 %s2074_s0, 4  ;;  %s1897_s17 = sshra.s32 %s205_s18, 4  ;;  %s207_s1 = int_to_ptr.vmem [resolvable:$true] %s206_s1  ;;  %s1898_s17 = int_to_ptr.hbm [resolvable:$true] %s1897_s17 }
  0x9c   :  { %s1899_s19 = scalar_lea.hbm %s1898_s17, 1  ;;  %s1901_s28 = scalar_lea.hbm %s2206_s6, 1 }
  0x9d   :  { %p1900_p12 = scmp.ne.s32.totalorder %s1898_s17, %s1899_s19  ;;  %p1902_p13 = scmp.lt.s32.totalorder %s1898_s17, %s2206_s6 }
  0x9e   :  { %p1903_p0 = scmp.lt.s32.totalorder %s1901_s28, %s1899_s19 }
  0xa0   :  { %p1904_p1 = por %p1903_p0, %p1902_p13 }
  0xa2   :  { %p1905_p2 = pnand %p1904_p1, %p1900_p12 }
  0xa4   :  { %1908 = shalt.err (!%p1905_p2)
}
  0xa5   :  { %209 = dma.hbm_to_vmem [thread:$0]  %s205_s18, 16, %s207_s1, [#allocation17]  }
  0xa6   :  { %s2075_s27 = smov [#allocation19]   ;;  %s1921_s7 = sshra.s32 %s216_s30, 4  ;;  %s1922_s7 = int_to_ptr.hbm [resolvable:$true] %s1921_s7 }
  0xa7   :  { %s217_s2 = sshll.u32 %s2075_s27, 4  ;;  %s1923_s10 = scalar_lea.hbm %s1922_s7, 1  ;;  %s218_s2 = int_to_ptr.vmem [resolvable:$true] %s217_s2 }
  0xa8   :  { %p1924_p3 = scmp.ne.s32.totalorder %s1922_s7, %s1923_s10  ;;  %s1925_s15 = scalar_lea.hbm %s2211_s9, 1 }
  0xa9   :  { %p1926_p4 = scmp.lt.s32.totalorder %s1922_s7, %s2211_s9  ;;  %p1927_p5 = scmp.lt.s32.totalorder %s1925_s15, %s1923_s10 }
  0xab   :  { %p1928_p6 = por %p1927_p5, %p1926_p4 }
  0xad   :  { %p1929_p7 = pnand %p1928_p6, %p1924_p3 }
  0xaf   :  { %1932 = shalt.err (!%p1929_p7)
}
  0xb0   :  { %220 = dma.hbm_to_vmem [thread:$0]  %s216_s30, 16, %s218_s2, [#allocation20]  }
  0xb1   :  { %2017 = dma.done.wait [#allocation5], 256  }
  0xb2   :  { %2018 = vsyncadd [#allocation5], 4294967040 }
  0xb3   :  { %2019 = dma.done.wait [#allocation8], 32  }
  0xb4   :  { %2020 = vsyncadd [#allocation8], 4294967264 }
  0xb5   :  { %2021 = dma.done.wait [#allocation11], 48  }
  0xb6   :  { %2022 = vsyncadd [#allocation11], 4294967248 }
  0xb7   :  { %2023 = dma.done.wait [#allocation14], 32  }
  0xb8   :  { %2024 = vsyncadd [#allocation14], 4294967264 }
  0xb9   :  { %2025 = dma.done.wait [#allocation17], 32  }
  0xba   :  { %2026 = vsyncadd [#allocation17], 4294967264 }
  0xbb   :  { %2027 = dma.done.wait [#allocation20], 16  }
  0xbc   :  { %2028 = vsyncadd [#allocation20], 4294967280  ;;  %vm271_vm0 = vcmask 130048   ;;  %v2286_v0 = vld [vmem:[%s2091_s5] sm:$0xff]  ;;  %v2289_v1 = vld [vmem:[%s2091_s5 + $0x8] sm:$0xff]  ;;  %v2076_v10 = vmov 256.0   ;;  %v338_v46 = vstv %s2111_s21  ;;  %v342_v49 = vstv %s2116_s25 }
  0xbd   :  { %v272_v2 = vsel %vm271_vm0, %v2286_v0, 0.0  ;;  %v273_v3 = vsel %vm271_vm0, %v2289_v1, 0.0  ;;  %v284_v4 = vmul.f32 %v2286_v0, %v2286_v0  ;;  %v285_v5 = vmul.f32 %v2289_v1, %v2289_v1  ;;  %v1562_v39 = vld [vmem:[%s2121_s29 + $0x18] sm:$0xff]  ;;  %v1561_v40 = vld [vmem:[%s2121_s29 + $0x10] sm:$0xff]  ;;  %v410_v41 = vld [vmem:[%s2121_s29 + $0x8] sm:$0xff]  ;;  %s2551_s22 = sld [smem:[#allocation34_spill]] }
  0xbe   :  { %v274_v6 = vadd.f32 %v273_v3, %v272_v2  ;;  %1691 = vrcp.f32 %v2076_v10  ;;  %434 = vmatpush.msra.mxu2 %v1562_v39  ;;  %1628 = vmatpush.msra.mxu3 %v1562_v39  ;;  %v2314_v55 = vld [vmem:[#allocation4] sm:$0xff]  ;;  %v2325_v57 = vld [vmem:[#allocation4 + $0x8] sm:$0xff]  ;;  %s2552_s21 = sld [smem:[#allocation36_spill]]  ;;  %vm676_vm5 = vcmask 1043456   ;;  %vm506_vm6 = vcmask 261120   ;;  %s2077_s26 = smov 96  }
  0xbf   :  { %v286_v7 = vsel %vm271_vm0, %v284_v4, 0.0  ;;  %v287_v8 = vsel %vm271_vm0, %v285_v5, 0.0  ;;  %v409_v58 = vld [vmem:[%s2121_s29] sm:$0xff]  ;;  %v1568_v59 = vld [vmem:[%s2121_s29 + $0x28] sm:$0xff]  ;;  %s2553_s25 = sld [smem:[#allocation35_spill]]  ;;  %vm669_vm7 = vcmask 31744  }
  0xc0   :  { %275 = vadd.xlane.f32.xlu0 %v274_v6  ;;  %v288_v9 = vadd.f32 %v287_v8, %v286_v7  ;;  %435 = vmatpush.msra.mxu2 %v1561_v40  ;;  %v1567_v60 = vld [vmem:[%s2121_s29 + $0x20] sm:$0xff]  ;;  %s2554_s29 = sld [smem:[#allocation33_spill]]  ;;  %vm609_vm8 = vcmask 1041408   ;;  %vm605_vm12 = vcmask 15360  }
  0xc1   :  { %1629 = vmatpush.msra.mxu3 %v1561_v40  ;;  %v604_v40 = vld [vmem:[#allocation12] sm:$0x3]  ;;  %s2555_s30 = sld [smem:[#allocation37_spill]] }
  0xc2   :  { %s2556_s0 = sld [smem:[#allocation38_spill]] }
  0xc3   :  { %463 = vmatpush.msrb.mxu3 %v410_v41  ;;  %v2312_v54 = vld [vmem:[%s2551_s22] sm:$0xff]  ;;  %v2323_v56 = vld [vmem:[%s2551_s22 + $0x8] sm:$0xff]  ;;  %s2557_s1 = sld [smem:[#allocation40_spill]] }
  0xc4   :  { %v1692_v11 = vpop.eup %1691  ;;  %v529_v2 = vld [vmem:[%s2552_s21 + $0x10] sm:$0xff]  ;;  %v528_v3 = vld [vmem:[%s2552_s21 + $0x8] sm:$0xff]  ;;  %v527_v5 = vld [vmem:[%s2552_s21] sm:$0xff]  ;;  %s2558_s17 = sld [smem:[#allocation39_spill]] }
  0xc5   :  { %v299_v15 = vmul.f32 256.0, %v1692_v11  ;;  %vm303_vm1 = vweird.f32 %v1692_v11  ;;  %464 = vmatpush.msrb.mxu3 %v409_v58  ;;  %v664_v7 = vld [vmem:[%s2553_s25] sm:$0xf]  ;;  %s2559_s19 = sld [smem:[#allocation41_spill]] }
  0xc6   :  { %s2560_s28 = sld [smem:[#allocation42_spill]] }
  0xc7   :  { %v300_v18 = vsub.f32 1.0, %v299_v15  ;;  %s2561_s27 = sld [smem:[#allocation43_spill]] }
  0xc8   :  { %289 = vadd.xlane.f32.xlu0 %v288_v9  ;;  %s2562_s2 = sld [smem:[#allocation46_spill]] }
  0xc9   :  { %v301_v24 = vmul.f32 %v1692_v11, %v300_v18  ;;  %s2563_s7 = sld [smem:[#allocation44_spill]] }
  0xca   :  { %s2564_s10 = sld [smem:[#allocation45_spill]] }
  0xcb   :  { %v302_v27 = vadd.f32 %v1692_v11, %v301_v24 }
  0xcd   :  { %v2301_v30 = vsel %vm303_vm1, %v1692_v11, %v302_v27 }
 0x133   :  { %v276_v12 = vpop.xlane.xlu0 %275 }
 0x134   :  { %v277_v13 = vrot.slane %v276_v12, 4 }
 0x136   :  { %v278_v14 = vadd.f32 %v277_v13, %v276_v12 }
 0x138   :  { %v279_v16 = vrot.slane %v278_v14, 2 }
 0x13a   :  { %v280_v17 = vadd.f32 %v279_v16, %v278_v14 }
 0x13b   :  { %v290_v19 = vpop.xlane.xlu0 %289 }
 0x13c   :  { %v291_v20 = vrot.slane %v290_v19, 4  ;;  %v281_v21 = vrot.slane %v280_v17, 1 }
 0x13e   :  { %v292_v22 = vadd.f32 %v291_v20, %v290_v19  ;;  %v282_v23 = vadd.f32 %v281_v21, %v280_v17 }
 0x140   :  { %v293_v25 = vrot.slane %v292_v22, 2  ;;  %1630 = vpush %v282_v23 }
 0x142   :  { %v294_v26 = vadd.f32 %v293_v25, %v292_v22 }
 0x144   :  { %v295_v28 = vrot.slane %v294_v26, 1 }
 0x146   :  { %v296_v29 = vadd.f32 %v295_v28, %v294_v26 }
 0x148   :  { %1632 = vpush %v296_v29 }
 0x149   :  { %1634 = vpush %v2301_v30 }
 0x171   :  { %s1631_s5 = spop %1630 }
 0x179   :  { %s1633_s9 = spop %1632 }
 0x17a   :  { %s1635_s6 = spop %1634 }
 0x17b   :  { %s306_s20 = smul.f32 %s1635_s6, %s1631_s5  ;;  %s1486_s5 = sshll.u32 %s2241_s14, 4  ;;  %s1487_s5 = int_to_ptr.hbm [resolvable:$true] %s1486_s5 }
 0x17c   :  { %s315_s11 = smul.f32 %s1635_s6, %s1633_s9  ;;  %s1957_s9 = sshra.s32 %s1487_s5, 4  ;;  %s1958_s9 = int_to_ptr.hbm [resolvable:$true] %s1957_s9 }
 0x17d   :  { %s316_s8 = smul.f32 %s306_s20, %s306_s20  ;;  %v318_v42 = vstv %s306_s20  ;;  %s1959_s6 = scalar_lea.hbm %s1958_s9, 16 }
 0x17e   :  { %v319_v43 = vsub.f32 %v2286_v0, %v318_v42  ;;  %v320_v44 = vsub.f32 %v2289_v1, %v318_v42  ;;  %v530_v1 = vld [vmem:[%s2552_s21 + $0x18] sm:$0xff]  ;;  %p1960_p8 = scmp.ne.s32.totalorder %s1958_s9, %s1959_s6  ;;  %s1961_s20 = scalar_lea.hbm %s2241_s14, 16 }
 0x17f   :  { %s317_s16 = ssub.f32 %s315_s11, %s316_s8  ;;  %569 = vmatpush.msrb.mxu2 %v530_v1  ;;  %p1962_p9 = scmp.lt.s32.totalorder %s1958_s9, %s2241_s14 }
 0x180   :  { %p1963_p10 = scmp.lt.s32.totalorder %s1961_s20, %s1959_s6 }
 0x181   :  { %s321_s18 = sadd.f32 1e-05, %s317_s16  ;;  %570 = vmatpush.msrb.mxu2 %v529_v2 }
 0x182   :  { %p1964_p11 = por %p1963_p10, %p1962_p9 }
 0x183   :  { %v322_v31 = vstv %s321_s18  ;;  %571 = vmatpush.msrb.mxu2 %v528_v3 }
 0x184   :  { %1693 = vrsqrt.f32 %v322_v31  ;;  %vm329_vm3 = vweird.f32 %v322_v31  ;;  %p1965_p12 = pnand %p1964_p11, %p1960_p8 }
 0x185   :  { %572 = vmatpush.msrb.mxu2 %v527_v5 }
 0x18a   :  { %v1694_v32 = vpop.eup %1693 }
 0x18b   :  { %v324_v33 = vmul.f32 %v1694_v32, %v322_v31  ;;  %vm330_vm2 = vweird.f32 %v1694_v32 }
 0x18c   :  { %vm331_vm4 = vmor %vm329_vm3, %vm330_vm2 }
 0x18d   :  { %v325_v34 = vmul.f32 %v1694_v32, %v324_v33 }
 0x18f   :  { %v326_v35 = vmul.f32 0.5, %v325_v34 }
 0x191   :  { %v327_v36 = vsub.f32 1.5, %v326_v35 }
 0x193   :  { %v328_v37 = vmul.f32 %v1694_v32, %v327_v36 }
 0x195   :  { %v332_v38 = vsel %vm331_vm4, %v1694_v32, %v328_v37  ;;  %v2361_v37 = vld [vmem:[%s2554_s29] sm:$0xff] }
 0x196   :  { %1636 = vpush %v332_v38  ;;  %v2366_v38 = vld [vmem:[%s2554_s29 + $0x8] sm:$0xff] }
 0x1c7   :  { %s1637_s23 = spop %1636 }
 0x1c8   :  { %v334_v45 = vstv %s1637_s23 }
 0x1c9   :  { %v335_v47 = vmul.f32 %v334_v45, %v319_v43  ;;  %v336_v48 = vmul.f32 %v334_v45, %v320_v44 }
 0x1cb   :  { %v339_v50 = vmul.f32 %v338_v46, %v335_v47  ;;  %v340_v51 = vmul.f32 %v338_v46, %v336_v48  ;;  %v1688_v47 = vld [vmem:[#allocation10] ss:$0 sm:$0xff] }
 0x1cd   :  { %v344_v52 = vadd.f32 %v342_v49, %v340_v51  ;;  %v343_v53 = vadd.f32 %v342_v49, %v339_v50 }
 0x1cf   :  { %371 = vmatpush.msra.mxu0 %v344_v52  ;;  %400 = vmatpush.msra.mxu1 %v344_v52 }
 0x1d0   :  { %1563 = vmatmul.msk.f32.vlgmr.msra.gmra.mxu2 %vm271_vm0, %v343_v53  ;;  %1564 = vmatmul.msk.f32.vlgmr.msra.gmra.mxu3 %vm271_vm0, %v344_v52 }
 0x1d1   :  { %372 = vmatpush.msra.mxu0 %v343_v53  ;;  %401 = vmatpush.msra.mxu1 %v343_v53 }
 0x1d2   :  { %1557 = vmatmul.msk.f32.vlgmr.msra.gmra.mxu0 %vm271_vm0, %v2312_v54  ;;  %1559 = vmatmul.msk.f32.vlgmr.msra.gmra.mxu1 %vm271_vm0, %v2314_v55 }
 0x1d3   :  { %495 = vmatpush.msrb.mxu0 %v1568_v59  ;;  %546 = vmatpush.msrb.mxu1 %v530_v1 }
 0x1d4   :  { %1577 = vmatpush.msk.msra.mxu2 %vm676_vm5, %v664_v7  ;;  %1573 = vmatpush.msk.msra.mxu3 %vm609_vm8, %v604_v40  ;;  %v1587_v7 = vld [vmem:[%s2556_s0 + $0x18] sm:$0xff] }
 0x1d5   :  { %496 = vmatpush.msrb.mxu0 %v1567_v60  ;;  %547 = vmatpush.msrb.mxu1 %v529_v2 }
 0x1d7   :  { %548 = vmatpush.msrb.mxu1 %v528_v3  ;;  %v720_v3 = vld [vmem:[%s2555_s30 + $0x18] sm:$0xff] }
 0x1d9   :  { %549 = vmatpush.msrb.mxu1 %v527_v5  ;;  %v718_v5 = vld [vmem:[%s2555_s30 + $0x8] sm:$0xff] }
 0x1da   :  { %1558 = vmatmul.msk.f32.gmra.mxu0 %vm271_vm0, %v2323_v56  ;;  %1560 = vmatmul.msk.f32.gmra.mxu1 %vm271_vm0, %v2325_v57 }
 0x1db   :  { %1575 = vmatpush.msk.msra.mxu1 %vm609_vm8, %v604_v40  ;;  %v914_v40 = vld [vmem:[%s2557_s1 + $0x8] sm:$0xff] }
 0x24f   :  { %v374_v61 = vpop.f32.mrf.mxu0  ;;  %v403_v62 = vpop.f32.mrf.mxu1 }
 0x250   :  { %1565 = vmatmul.msk.f32.vlgmr.msrb.gmra.mxu3 %vm271_vm0, %v374_v61  ;;  %1569 = vmatmul.msk.f32.vlgmr.msrb.gmra.mxu0 %vm271_vm0, %v403_v62 }
 0x251   :  { %739 = vmatpush.msrb.mxu3 %v720_v3 }
 0x253   :  { %v440_v4 = vpop.f32.mrf.mxu3  ;;  %v437_v9 = vpop.f32.mrf.mxu2 }
 0x257   :  { %v377_v63 = vpop.f32.mrf.mxu0  ;;  %v406_v0 = vpop.f32.mrf.mxu1 }
 0x258   :  { %1566 = vmatmul.msk.f32.gmra.mxu3 %vm271_vm0, %v377_v63  ;;  %1570 = vmatmul.msk.f32.gmra.mxu0 %vm271_vm0, %v406_v0  ;;  %v601_v0 = vld [vmem:[#allocation9] sm:$0x1] }
 0x2cd   :  { %v498_v6 = vpop.f32.mrf.mxu0 }
 0x2d3   :  { %v466_v8 = vpop.f32.mrf.mxu3 }
 0x2d4   :  { %v467_v10 = vadd.f32 %v466_v8, %v437_v9 }
 0x2d5   :  { %v501_v13 = vpop.f32.mrf.mxu0 }
 0x2d6   :  { %v2344_v11 = vadd.f32 %v498_v6, %v467_v10  ;;  %v717_v6 = vld [vmem:[%s2555_s30] sm:$0xff] }
 0x2d8   :  { %v516_v15 = vmul.f32 %v2344_v11, %v2344_v11  ;;  %v507_v17 = vsel %vm506_vm6, %v2344_v11, 0.0 }
 0x2da   :  { %v518_v21 = vsel %vm506_vm6, %v516_v15, 0.0 }
 0x2db   :  { %v469_v12 = vpop.f32.mrf.mxu3 }
 0x2dc   :  { %v470_v14 = vadd.f32 %v469_v12, %v440_v4  ;;  %v719_v4 = vld [vmem:[%s2555_s30 + $0x10] sm:$0xff] }
 0x2dd   :  { %740 = vmatpush.msrb.mxu3 %v719_v4 }
 0x2de   :  { %v2348_v16 = vadd.f32 %v501_v13, %v470_v14 }
 0x2df   :  { %741 = vmatpush.msrb.mxu3 %v718_v5 }
 0x2e0   :  { %v508_v18 = vsel %vm506_vm6, %v2348_v16, 0.0  ;;  %v517_v19 = vmul.f32 %v2348_v16, %v2348_v16 }
 0x2e1   :  { %v509_v20 = vadd.f32 %v508_v18, %v507_v17  ;;  %742 = vmatpush.msrb.mxu3 %v717_v6 }
 0x2e2   :  { %v519_v22 = vsel %vm506_vm6, %v517_v19, 0.0 }
 0x2e3   :  { %v510_v23 = vrot.slane %v509_v20, 4  ;;  %v520_v24 = vadd.f32 %v519_v22, %v518_v21 }
 0x2e5   :  { %v511_v25 = vadd.f32 %v510_v23, %v509_v20  ;;  %v521_v26 = vrot.slane %v520_v24, 4 }
 0x2e7   :  { %v512_v27 = vrot.slane %v511_v25, 2  ;;  %v522_v28 = vadd.f32 %v521_v26, %v520_v24 }
 0x2e9   :  { %v513_v29 = vadd.f32 %v512_v27, %v511_v25  ;;  %v523_v31 = vrot.slane %v522_v28, 2  ;;  %v797_v27 = vld [vmem:[%s2556_s0 + $0x8] sm:$0xff] }
 0x2eb   :  { %v514_v32 = vrot.slane %v513_v29, 1  ;;  %v524_v33 = vadd.f32 %v523_v31, %v522_v28  ;;  %v796_v28 = vld [vmem:[%s2556_s0] sm:$0xff] }
 0x2ec   :  { %v1592_v31 = vld [vmem:[%s2556_s0 + $0x20] sm:$0xff] }
 0x2ed   :  { %v515_v34 = vadd.f32 %v514_v32, %v513_v29  ;;  %v525_v35 = vrot.slane %v524_v33, 1  ;;  %v1593_v29 = vld [vmem:[%s2556_s0 + $0x28] sm:$0xff] }
 0x2ef   :  { %1571 = vmatmul.msk.f32.vlgmr.msrb.gmra.mxu1 %vm506_vm6, %v515_v34  ;;  %v526_v36 = vadd.f32 %v525_v35, %v524_v33 }
 0x2f1   :  { %1572 = vmatmul.msk.f32.vlgmr.msrb.gmra.mxu2 %vm506_vm6, %v526_v36  ;;  %v916_v36 = vld [vmem:[%s2557_s1 + $0x18] sm:$0xff] }
 0x2f2   :  { %821 = vmatpush.msrb.mxu2 %v1587_v7 }
 0x2f9   :  { %1578 = vmatmul.msk.f32.vlgmr.msra.gmra.mxu2 %vm669_vm7, %v2361_v37 }
 0x301   :  { %1579 = vmatmul.msk.f32.gmra.mxu2 %vm669_vm7, %v2366_v38 }
 0x36c   :  { %v551_v39 = vpop.f32.mrf.mxu1 }
 0x36d   :  { %v584_v41 = vmul.f32 %v551_v39, %v2301_v30  ;;  %v915_v39 = vld [vmem:[%s2557_s1 + $0x10] sm:$0xff] }
 0x36f   :  { %v586_v43 = vmul.f32 %v584_v41, %v584_v41 }
 0x374   :  { %v574_v42 = vpop.f32.mrf.mxu2 }
 0x375   :  { %v585_v44 = vmul.f32 %v574_v42, %v2301_v30  ;;  %v588_v30 = vld [vmem:[#allocation7] sm:$0x1] }
 0x377   :  { %v587_v45 = vsub.f32 %v585_v44, %v586_v43 }
 0x379   :  { %v589_v46 = vadd.f32 1e-05, %v587_v45 }
 0x37b   :  { %1695 = vrsqrt.f32 %v589_v46  ;;  %vm596_vm10 = vweird.f32 %v589_v46 }
 0x37c   :  { %v697_v48 = vpop.f32.mrf.mxu2 }
 0x37d   :  { %v698_v49 = vadd.f32 %v1688_v47, %v697_v48 }
 0x37f   :  { %707 = vrot.lane.b32.xlu1 %v698_v49, %s2077_s26 }
 0x381   :  { %v1696_v50 = vpop.eup %1695 }
 0x382   :  { %v591_v51 = vmul.f32 %v1696_v50, %v589_v46  ;;  %vm597_vm9 = vweird.f32 %v1696_v50  ;;  %v1048_v46 = vld [vmem:[%s2558_s17] sm:$0xf] }
 0x383   :  { %vm598_vm11 = vmor %vm596_vm10, %vm597_vm9 }
 0x384   :  { %v592_v52 = vmul.f32 %v1696_v50, %v591_v51  ;;  %v700_v53 = vpop.f32.mrf.mxu2 }
 0x385   :  { %v701_v58 = vadd.f32 %v1688_v47, %v700_v53 }
 0x386   :  { %v593_v59 = vmul.f32 0.5, %v592_v52 }
 0x387   :  { %709 = vrot.lane.b32.xlu1 %v701_v58, %s2077_s26 }
 0x388   :  { %v594_v60 = vsub.f32 1.5, %v593_v59 }
 0x38a   :  { %v595_v61 = vmul.f32 %v1696_v50, %v594_v60 }
 0x38c   :  { %v599_v62 = vsel %vm598_vm11, %v1696_v50, %v595_v61 }
 0x38d   :  { %v600_v63 = vmul.f32 %v599_v62, %v588_v30 }
 0x38f   :  { %v602_v1 = vmul.f32 %v600_v63, %v584_v41  ;;  %1574 = vmatmul.msk.f32.vlgmr.msra.gmra.mxu3 %vm605_vm12, %v600_v63  ;;  %v913_v41 = vld [vmem:[%s2557_s1] sm:$0xff] }
 0x390   :  { %850 = vmatpush.msra.mxu3 %v797_v27 }
 0x391   :  { %v603_v2 = vsub.f32 %v601_v0, %v602_v1 }
 0x392   :  { %851 = vmatpush.msra.mxu3 %v796_v28 }
 0x393   :  { %1576 = vmatmul.msk.f32.vlgmr.msra.gmra.mxu1 %vm605_vm12, %v603_v2 }
 0x3f1   :  { %v708_v8 = vpop.permute.xlu1 %707 }
 0x3f9   :  { %v710_v21 = vpop.permute.xlu1 %709 }
 0x410   :  { %v653_v9 = vpop.f32.mrf.mxu1 }
 0x411   :  { %v659_v13 = vperm.slane %v653_v9, 0 }
 0x412   :  { %v630_v10 = vpop.f32.mrf.mxu3 }
 0x413   :  { %v656_v12 = vperm.slane %v630_v10, 0 }
 0x415   :  { %v657_v14 = vmul.f32 %v656_v12, %v2344_v11  ;;  %v658_v15 = vmul.f32 %v656_v12, %v2348_v16  ;;  %v1586_v11 = vld [vmem:[%s2556_s0 + $0x10] sm:$0xff] }
 0x416   :  { %822 = vmatpush.msrb.mxu2 %v1586_v11 }
 0x417   :  { %v660_v17 = vadd.f32 %v659_v13, %v657_v14  ;;  %v661_v18 = vadd.f32 %v659_v13, %v658_v15  ;;  %v2078_v13 = vmov 128.0  }
 0x418   :  { %1697 = vrcp.f32 %v2078_v13  ;;  %v1172_v13 = vld [vmem:[%s2561_s27] sm:$0xff] }
 0x419   :  { %v662_v19 = vmax.f32 %v660_v17, 0.0  ;;  %v663_v20 = vmax.f32 %v661_v18, 0.0 }
 0x41b   :  { %v703_v22 = vmul.f32 %v698_v49, %v662_v19  ;;  %v704_v23 = vmul.f32 %v701_v58, %v663_v20 }
 0x41d   :  { %v713_v24 = vadd.f32 %v708_v8, %v703_v22  ;;  %v714_v25 = vadd.f32 %v710_v21, %v704_v23  ;;  %v990_v22 = vld [vmem:[%s2559_s19] sm:$0xf] }
 0x41e   :  { %v1698_v14 = vpop.eup %1697  ;;  %1598 = vmatpush.msk.msra.mxu2 %vm676_vm5, %v990_v22 }
 0x41f   :  { %715 = vst.msk [vmem:[#allocation21] sm:$0xff] %vm506_vm6, %v713_v24  ;;  %1580 = vmatmul.msk.f32.vlgmr.msrb.gmra.mxu3 %vm506_vm6, %v713_v24  ;;  %v964_v15 = vmul.f32 128.0, %v1698_v14  ;;  %vm968_vm13 = vweird.f32 %v1698_v14  ;;  %v1689_v24 = vld [vmem:[#allocation16] ss:$0 sm:$0xff] }
 0x420   :  { %716 = vst.msk [vmem:[#allocation21 + $0x8] sm:$0xff] %vm506_vm6, %v714_v25  ;;  %1600 = vmatpush.msk.msrb.mxu3 %vm676_vm5, %v990_v22 }
 0x421   :  { %v965_v17 = vsub.f32 1.0, %v964_v15  ;;  %v1292_v15 = vld [vmem:[%s2562_s2 + $0x18] sm:$0xff] }
 0x423   :  { %v966_v18 = vmul.f32 %v1698_v14, %v965_v17  ;;  %v1291_v17 = vld [vmem:[%s2562_s2 + $0x10] sm:$0xff] }
 0x425   :  { %v967_v19 = vadd.f32 %v1698_v14, %v966_v18  ;;  %v1290_v18 = vld [vmem:[%s2562_s2 + $0x8] sm:$0xff] }
 0x427   :  { %1581 = vmatmul.msk.f32.gmra.mxu3 %vm506_vm6, %v714_v25  ;;  %v969_v21 = vsel %vm968_vm13, %v1698_v14, %v967_v19  ;;  %v1617_v14 = vld [vmem:[%s2561_s27 + $0x20] sm:$0xff] }
 0x428   :  { %v1289_v19 = vld [vmem:[%s2562_s2] sm:$0xff] }
 0x4a2   :  { %v744_v16 = vpop.f32.mrf.mxu3 }
 0x4a3   :  { %1588 = vmatmul.msk.f32.vlgmr.msrb.gmra.mxu2 %vm271_vm0, %v744_v16 }
 0x4aa   :  { %v747_v26 = vpop.f32.mrf.mxu3 }
 0x4ab   :  { %764 = vmatpush.msra.mxu0 %v747_v26  ;;  %787 = vmatpush.msrb.mxu1 %v747_v26 }
 0x4ac   :  { %1589 = vmatmul.msk.f32.gmra.mxu2 %vm271_vm0, %v747_v26 }
 0x4ad   :  { %765 = vmatpush.msra.mxu0 %v744_v16  ;;  %788 = vmatpush.msrb.mxu1 %v744_v16 }
 0x4ae   :  { %1582 = vmatmul.msk.f32.vlgmr.msra.gmra.mxu0 %vm271_vm0, %v2312_v54  ;;  %1584 = vmatmul.msk.f32.vlgmr.msrb.gmra.mxu1 %vm271_vm0, %v2314_v55 }
 0x4af   :  { %882 = vmatpush.msrb.mxu0 %v1593_v29  ;;  %932 = vmatpush.msra.mxu1 %v916_v36 }
 0x4b1   :  { %883 = vmatpush.msrb.mxu0 %v1592_v31  ;;  %933 = vmatpush.msra.mxu1 %v915_v39 }
 0x4b3   :  { %934 = vmatpush.msra.mxu1 %v914_v40  ;;  %1602 = vmatpush.msk.msra.mxu0 %vm676_vm5, %v1048_v46 }
 0x4b5   :  { %935 = vmatpush.msra.mxu1 %v913_v41 }
 0x4b6   :  { %1583 = vmatmul.msk.f32.gmra.mxu0 %vm271_vm0, %v2323_v56  ;;  %1585 = vmatmul.msk.f32.gmra.mxu1 %vm271_vm0, %v2325_v57 }
 0x4b7   :  { %955 = vmatpush.msrb.mxu1 %v916_v36 }
 0x4b9   :  { %956 = vmatpush.msrb.mxu1 %v915_v39 }
 0x4bb   :  { %957 = vmatpush.msrb.mxu1 %v914_v40  ;;  %v974_v40 = vld [vmem:[#allocation13] sm:$0x1] }
 0x4bd   :  { %958 = vmatpush.msrb.mxu1 %v913_v41 }
 0x526   :  { %v824_v42 = vpop.f32.mrf.mxu2 }
 0x52b   :  { %v767_v32 = vpop.f32.mrf.mxu0  ;;  %v790_v33 = vpop.f32.mrf.mxu1 }
 0x52c   :  { %1590 = vmatmul.msk.f32.vlgmr.msra.gmra.mxu3 %vm271_vm0, %v767_v32  ;;  %1594 = vmatmul.msk.f32.vlgmr.msrb.gmra.mxu0 %vm271_vm0, %v790_v33 }
 0x52f   :  { %v827_v47 = vpop.f32.mrf.mxu2 }
 0x533   :  { %v770_v34 = vpop.f32.mrf.mxu0  ;;  %v793_v35 = vpop.f32.mrf.mxu1 }
 0x534   :  { %1591 = vmatmul.msk.f32.gmra.mxu3 %vm271_vm0, %v770_v34  ;;  %1595 = vmatmul.msk.f32.gmra.mxu0 %vm271_vm0, %v793_v35 }
 0x53c   :  { %1603 = vmatmul.msk.f32.vlgmr.msra.gmra.mxu0 %vm669_vm7, %v2361_v37 }
 0x544   :  { %1604 = vmatmul.msk.f32.gmra.mxu0 %vm669_vm7, %v2366_v38 }
 0x5a9   :  { %v885_v43 = vpop.f32.mrf.mxu0 }
 0x5af   :  { %v853_v44 = vpop.f32.mrf.mxu3 }
 0x5b0   :  { %v854_v45 = vadd.f32 %v853_v44, %v824_v42  ;;  %v987_v44 = vld [vmem:[#allocation15] sm:$0x1] }
 0x5b1   :  { %v888_v50 = vpop.f32.mrf.mxu0 }
 0x5b2   :  { %v2412_v48 = vadd.f32 %v885_v43, %v854_v45 }
 0x5b4   :  { %v902_v52 = vmul.f32 %v2412_v48, %v2412_v48  ;;  %v893_v58 = vsel %vm506_vm6, %v2412_v48, 0.0 }
 0x5b6   :  { %v904_v61 = vsel %vm506_vm6, %v902_v52, 0.0  ;;  %v1612_v52 = vld [vmem:[%s2561_s27 + $0x18] sm:$0xff] }
 0x5b7   :  { %v856_v49 = vpop.f32.mrf.mxu3  ;;  %1197 = vmatpush.msrb.mxu0 %v1612_v52 }
 0x5b8   :  { %v857_v51 = vadd.f32 %v856_v49, %v827_v47  ;;  %v1096_v47 = vld [vmem:[%s2560_s28 + $0x18] sm:$0xff]  ;;  %v1095_v49 = vld [vmem:[%s2560_s28 + $0x10] sm:$0xff] }
 0x5b9   :  { %v1073_v25 = vpop.f32.mrf.mxu0 }
 0x5ba   :  { %v2416_v53 = vadd.f32 %v888_v50, %v857_v51  ;;  %v1074_v27 = vadd.f32 %v1689_v24, %v1073_v25  ;;  %v1094_v50 = vld [vmem:[%s2560_s28 + $0x8] sm:$0xff]  ;;  %v1093_v51 = vld [vmem:[%s2560_s28] sm:$0xff] }
 0x5bc   :  { %v894_v59 = vsel %vm506_vm6, %v2416_v53, 0.0  ;;  %v903_v60 = vmul.f32 %v2416_v53, %v2416_v53  ;;  %1083 = vrot.lane.b32.xlu2 %v1074_v27, %s2077_s26 }
 0x5bd   :  { %v895_v30 = vadd.f32 %v894_v59, %v893_v58 }
 0x5be   :  { %v905_v62 = vsel %vm506_vm6, %v903_v60, 0.0 }
 0x5bf   :  { %v896_v63 = vrot.slane %v895_v30, 4  ;;  %v906_v0 = vadd.f32 %v905_v62, %v904_v61 }
 0x5c1   :  { %v897_v1 = vadd.f32 %v896_v63, %v895_v30  ;;  %v907_v2 = vrot.slane %v906_v0, 4  ;;  %v1076_v31 = vpop.f32.mrf.mxu0 }
 0x5c2   :  { %v1077_v32 = vadd.f32 %v1689_v24, %v1076_v31 }
 0x5c3   :  { %v898_v3 = vrot.slane %v897_v1, 2  ;;  %v908_v4 = vadd.f32 %v907_v2, %v906_v0 }
 0x5c4   :  { %1085 = vrot.lane.b32.xlu2 %v1077_v32, %s2077_s26 }
 0x5c5   :  { %v899_v5 = vadd.f32 %v898_v3, %v897_v1  ;;  %v909_v6 = vrot.slane %v908_v4, 2 }
 0x5c7   :  { %v900_v7 = vrot.slane %v899_v5, 1  ;;  %v910_v8 = vadd.f32 %v909_v6, %v908_v4 }
 0x5c9   :  { %v901_v9 = vadd.f32 %v900_v7, %v899_v5  ;;  %v911_v10 = vrot.slane %v910_v8, 1 }
 0x5cb   :  { %1596 = vmatmul.msk.f32.vlgmr.msra.gmra.mxu1 %vm506_vm6, %v901_v9  ;;  %v912_v12 = vadd.f32 %v911_v10, %v910_v8  ;;  %v1173_v10 = vld [vmem:[%s2561_s27 + $0x8] sm:$0xff] }
 0x5cc   :  { %1115 = vmatpush.msra.mxu1 %v1096_v47 }
 0x5ce   :  { %1116 = vmatpush.msra.mxu1 %v1095_v49 }
 0x5d0   :  { %1117 = vmatpush.msra.mxu1 %v1094_v50 }
 0x5d2   :  { %1118 = vmatpush.msra.mxu1 %v1093_v51  ;;  %v2079_v51 = vmov 64.0  }
 0x5d3   :  { %1597 = vmatmul.msk.f32.vlgmr.msrb.gmra.mxu1 %vm506_vm6, %v912_v12  ;;  %v1618_v12 = vld [vmem:[%s2561_s27 + $0x28] sm:$0xff] }
 0x5d4   :  { %1226 = vmatpush.msrb.mxu1 %v1173_v10 }
 0x5d6   :  { %1227 = vmatpush.msrb.mxu1 %v1172_v13 }
 0x616   :  { %v1084_v59 = vpop.permute.xlu2 %1083 }
 0x61e   :  { %v1086_v4 = vpop.permute.xlu2 %1085 }
 0x648   :  { %v937_v20 = vpop.f32.mrf.mxu1 }
 0x649   :  { %v970_v23 = vmul.f32 %v969_v21, %v937_v20 }
 0x64b   :  { %v972_v16 = vmul.f32 %v970_v23, %v970_v23 }
 0x650   :  { %v960_v11 = vpop.f32.mrf.mxu1 }
 0x651   :  { %v971_v26 = vmul.f32 %v969_v21, %v960_v11 }
 0x653   :  { %v973_v28 = vsub.f32 %v971_v26, %v972_v16 }
 0x655   :  { %v975_v29 = vadd.f32 1e-05, %v973_v28 }
 0x657   :  { %1699 = vrsqrt.f32 %v975_v29  ;;  %vm982_vm15 = vweird.f32 %v975_v29 }
 0x658   :  { %1701 = vrcp.f32 %v2079_v51 }
 0x65d   :  { %v1700_v33 = vpop.eup %1699 }
 0x65e   :  { %v977_v34 = vmul.f32 %v1700_v33, %v975_v29  ;;  %vm983_vm14 = vweird.f32 %v1700_v33  ;;  %v1702_v52 = vpop.eup %1701 }
 0x65f   :  { %vm984_vm1 = vmor %vm982_vm15, %vm983_vm14 }
 0x660   :  { %v978_v35 = vmul.f32 %v1700_v33, %v977_v34 }
 0x662   :  { %v979_v36 = vmul.f32 0.5, %v978_v35 }
 0x664   :  { %v980_v39 = vsub.f32 1.5, %v979_v36 }
 0x666   :  { %v981_v41 = vmul.f32 %v1700_v33, %v980_v39 }
 0x668   :  { %v985_v42 = vsel %vm984_vm1, %v1700_v33, %v981_v41 }
 0x669   :  { %v986_v43 = vmul.f32 %v985_v42, %v974_v40 }
 0x66b   :  { %v988_v45 = vmul.f32 %v986_v43, %v970_v23  ;;  %1599 = vmatmul.msk.f32.vlgmr.msra.gmra.mxu2 %vm669_vm7, %v986_v43  ;;  %v1422_v23 = vld [vmem:[%s2563_s7] sm:$0xf] }
 0x66d   :  { %v989_v46 = vsub.f32 %v987_v44, %v988_v45 }
 0x66f   :  { %1601 = vmatmul.msk.f32.vlgmr.msrb.gmra.mxu3 %vm669_vm7, %v989_v46 }
 0x6ee   :  { %v1014_v58 = vpop.f32.mrf.mxu2 }
 0x6ef   :  { %v1040_v60 = vperm.slane %v1014_v58, 0  ;;  %v1340_v58 = vmul.f32 64.0, %v1702_v52 }
 0x6f1   :  { %v1041_v61 = vmul.f32 %v1040_v60, %v2412_v48  ;;  %v1042_v62 = vmul.f32 %v1040_v60, %v2416_v53  ;;  %v1611_v48 = vld [vmem:[%s2561_s27 + $0x10] sm:$0xff] }
 0x6f2   :  { %v1037_v30 = vpop.f32.mrf.mxu3  ;;  %1198 = vmatpush.msrb.mxu0 %v1611_v48 }
 0x6f3   :  { %v1043_v63 = vperm.slane %v1037_v30, 0 }
 0x6f5   :  { %v1044_v0 = vadd.f32 %v1043_v63, %v1041_v61  ;;  %v1045_v1 = vadd.f32 %v1043_v63, %v1042_v62  ;;  %v1366_v63 = vld [vmem:[%s2231_s13] sm:$0xff]  ;;  %s2080_s13 = smov [#allocation22]  }
 0x6f6   :  { %1386 = vmatpush.msra.mxu0 %v1366_v63  ;;  %s1484_s15 = sshll.u32 %s2080_s13, 4  ;;  %s1485_s15 = int_to_ptr.vmem [resolvable:$true] %s1484_s15 }
 0x6f7   :  { %v1046_v2 = vmax.f32 %v1044_v0, 0.0  ;;  %v1047_v3 = vmax.f32 %v1045_v1, 0.0  ;;  %v1690_v1 = vld [vmem:[%s2564_s10] ss:$0 sm:$0xff] }
 0x6f9   :  { %v1079_v5 = vmul.f32 %v1074_v27, %v1046_v2  ;;  %v1080_v6 = vmul.f32 %v1077_v32, %v1047_v3 }
 0x6fb   :  { %v1089_v7 = vadd.f32 %v1084_v59, %v1079_v5  ;;  %v1090_v8 = vadd.f32 %v1086_v4, %v1080_v6  ;;  %v1341_v59 = vsub.f32 1.0, %v1340_v58 }
 0x6fd   :  { %1091 = vst.msk [vmem:[#allocation22] sm:$0xff] %vm506_vm6, %v1089_v7  ;;  %1605 = vmatmul.msk.f32.vlgmr.msra.gmra.mxu1 %vm506_vm6, %v1089_v7  ;;  %v1342_v60 = vmul.f32 %v1702_v52, %v1341_v59 }
 0x6fe   :  { %1092 = vst.msk [vmem:[#allocation22 + $0x8] sm:$0xff] %vm506_vm6, %v1090_v8  ;;  %1409 = vmatpush.msra.mxu1 %v1366_v63 }
 0x6ff   :  { %v1343_v30 = vadd.f32 %v1702_v52, %v1342_v60 }
 0x705   :  { %1606 = vmatmul.msk.f32.gmra.mxu1 %vm506_vm6, %v1090_v8 }
 0x77a   :  { %v1120_v53 = vpop.f32.mrf.mxu1 }
 0x77b   :  { %1613 = vmatmul.msk.f32.vlgmr.msrb.gmra.mxu0 %vm271_vm0, %v1120_v53 }
 0x782   :  { %v1123_v9 = vpop.f32.mrf.mxu1 }
 0x783   :  { %1140 = vmatpush.msrb.mxu2 %v1123_v9  ;;  %1163 = vmatpush.msra.mxu3 %v1123_v9 }
 0x784   :  { %1614 = vmatmul.msk.f32.gmra.mxu0 %vm271_vm0, %v1123_v9 }
 0x785   :  { %1141 = vmatpush.msrb.mxu2 %v1120_v53  ;;  %1164 = vmatpush.msra.mxu3 %v1120_v53 }
 0x786   :  { %1607 = vmatmul.msk.f32.vlgmr.msrb.gmra.mxu2 %vm271_vm0, %v2312_v54  ;;  %1609 = vmatmul.msk.f32.vlgmr.msra.gmra.mxu3 %vm271_vm0, %v2314_v55 }
 0x787   :  { %1258 = vmatpush.msra.mxu2 %v1618_v12  ;;  %1308 = vmatpush.msrb.mxu3 %v1292_v15 }
 0x789   :  { %1259 = vmatpush.msra.mxu2 %v1617_v14  ;;  %1309 = vmatpush.msrb.mxu3 %v1291_v17 }
 0x78b   :  { %1310 = vmatpush.msrb.mxu3 %v1290_v18  ;;  %1625 = vmatpush.msk.msrb.mxu2 %vm676_vm5, %v1422_v23  ;;  %vm1367_vm5 = vcmask 64512  }
 0x78d   :  { %1311 = vmatpush.msrb.mxu3 %v1289_v19 }
 0x78e   :  { %1608 = vmatmul.msk.f32.gmra.mxu2 %vm271_vm0, %v2323_v56  ;;  %1610 = vmatmul.msk.f32.gmra.mxu3 %vm271_vm0, %v2325_v57 }
 0x78f   :  { %1331 = vmatpush.msra.mxu3 %v1292_v15  ;;  %v1363_v15 = vld [vmem:[#allocation19] sm:$0x1] }
 0x791   :  { %1332 = vmatpush.msra.mxu3 %v1291_v17 }
 0x793   :  { %1333 = vmatpush.msra.mxu3 %v1290_v18 }
 0x795   :  { %1334 = vmatpush.msra.mxu3 %v1289_v19 }
 0x7f8   :  { %v1200_v21 = vpop.f32.mrf.mxu0 }
 0x801   :  { %v1203_v16 = vpop.f32.mrf.mxu0 }
 0x809   :  { %v1143_v54 = vpop.f32.mrf.mxu2  ;;  %v1166_v55 = vpop.f32.mrf.mxu3 }
 0x80a   :  { %1615 = vmatmul.msk.f32.vlgmr.msrb.gmra.mxu1 %vm271_vm0, %v1143_v54  ;;  %1619 = vmatmul.msk.f32.vlgmr.msra.gmra.mxu2 %vm271_vm0, %v1166_v55  ;;  %v1350_v54 = vld [vmem:[#allocation18] sm:$0x1] }
 0x811   :  { %v1146_v56 = vpop.f32.mrf.mxu2  ;;  %v1169_v57 = vpop.f32.mrf.mxu3 }
 0x812   :  { %1616 = vmatmul.msk.f32.gmra.mxu1 %vm271_vm0, %v1146_v56  ;;  %1620 = vmatmul.msk.f32.gmra.mxu2 %vm271_vm0, %v1169_v57  ;;  %vm1344_vm0 = vweird.f32 %v1702_v52 }
 0x813   :  { %v1345_v62 = vsel %vm1344_vm0, %v1702_v52, %v1343_v30 }
 0x81a   :  { %1626 = vmatmul.msk.f32.vlgmr.msrb.gmra.mxu2 %vm669_vm7, %v2361_v37 }
 0x822   :  { %1627 = vmatmul.msk.f32.gmra.mxu2 %vm669_vm7, %v2366_v38 }
 0x887   :  { %v1229_v20 = vpop.f32.mrf.mxu1 }
 0x888   :  { %v1230_v24 = vadd.f32 %v1229_v20, %v1200_v21 }
 0x88d   :  { %v1261_v22 = vpop.f32.mrf.mxu2 }
 0x88e   :  { %v2475_v11 = vadd.f32 %v1261_v22, %v1230_v24 }
 0x88f   :  { %v1232_v25 = vpop.f32.mrf.mxu1 }
 0x890   :  { %v1233_v26 = vadd.f32 %v1232_v25, %v1203_v16  ;;  %v1278_v28 = vmul.f32 %v2475_v11, %v2475_v11  ;;  %v1269_v31 = vsel %vm506_vm6, %v2475_v11, 0.0 }
 0x892   :  { %v1280_v34 = vsel %vm506_vm6, %v1278_v28, 0.0 }
 0x895   :  { %v1264_v27 = vpop.f32.mrf.mxu2 }
 0x896   :  { %v2479_v29 = vadd.f32 %v1264_v27, %v1233_v26 }
 0x898   :  { %v1270_v32 = vsel %vm506_vm6, %v2479_v29, 0.0  ;;  %v1279_v33 = vmul.f32 %v2479_v29, %v2479_v29 }
 0x899   :  { %v1271_v37 = vadd.f32 %v1270_v32, %v1269_v31 }
 0x89a   :  { %v1281_v35 = vsel %vm506_vm6, %v1279_v33, 0.0 }
 0x89b   :  { %v1272_v36 = vrot.slane %v1271_v37, 4  ;;  %v1282_v39 = vadd.f32 %v1281_v35, %v1280_v34 }
 0x89d   :  { %v1273_v40 = vadd.f32 %v1272_v36, %v1271_v37  ;;  %v1283_v41 = vrot.slane %v1282_v39, 4  ;;  %v1447_v2 = vpop.f32.mrf.mxu2 }
 0x89e   :  { %v2495_v6 = vadd.f32 %v1690_v1, %v1447_v2 }
 0x89f   :  { %v1274_v42 = vrot.slane %v1273_v40, 2  ;;  %v1284_v43 = vadd.f32 %v1283_v41, %v1282_v39 }
 0x8a0   :  { %1457 = vrot.lane.b32.xlu0 %v2495_v6, %s2077_s26 }
 0x8a1   :  { %v1275_v44 = vadd.f32 %v1274_v42, %v1273_v40  ;;  %v1285_v45 = vrot.slane %v1284_v43, 2 }
 0x8a3   :  { %v1276_v46 = vrot.slane %v1275_v44, 1  ;;  %v1286_v47 = vadd.f32 %v1285_v45, %v1284_v43 }
 0x8a5   :  { %v1277_v49 = vadd.f32 %v1276_v46, %v1275_v44  ;;  %v1287_v50 = vrot.slane %v1286_v47, 1  ;;  %v1450_v48 = vpop.f32.mrf.mxu2 }
 0x8a6   :  { %v2499_v53 = vadd.f32 %v1690_v1, %v1450_v48 }
 0x8a7   :  { %1621 = vmatmul.msk.f32.vlgmr.msrb.gmra.mxu3 %vm506_vm6, %v1277_v49  ;;  %v1288_v38 = vadd.f32 %v1287_v50, %v1286_v47 }
 0x8a8   :  { %1459 = vrot.lane.b32.xlu1 %v2499_v53, %s2077_s26 }
 0x8af   :  { %1622 = vmatmul.msk.f32.vlgmr.msra.gmra.mxu3 %vm506_vm6, %v1288_v38 }
 0x92a   :  { %v1313_v61 = vpop.f32.mrf.mxu3 }
 0x92b   :  { %v1346_v0 = vmul.f32 %v1345_v62, %v1313_v61 }
 0x92d   :  { %v1348_v4 = vmul.f32 %v1346_v0, %v1346_v0 }
 0x932   :  { %v1336_v3 = vpop.f32.mrf.mxu3 }
 0x933   :  { %v1347_v5 = vmul.f32 %v1345_v62, %v1336_v3 }
 0x935   :  { %v1349_v7 = vsub.f32 %v1347_v5, %v1348_v4 }
 0x937   :  { %v1351_v8 = vadd.f32 1e-05, %v1349_v7 }
 0x939   :  { %1703 = vrsqrt.f32 %v1351_v8  ;;  %vm1358_vm3 = vweird.f32 %v1351_v8 }
 0x93f   :  { %v1704_v9 = vpop.eup %1703 }
 0x940   :  { %v1353_v10 = vmul.f32 %v1704_v9, %v1351_v8  ;;  %vm1359_vm2 = vweird.f32 %v1704_v9 }
 0x941   :  { %vm1360_vm4 = vmor %vm1358_vm3, %vm1359_vm2 }
 0x942   :  { %v1354_v12 = vmul.f32 %v1704_v9, %v1353_v10 }
 0x944   :  { %v1355_v13 = vmul.f32 0.5, %v1354_v12 }
 0x946   :  { %v1356_v14 = vsub.f32 1.5, %v1355_v13 }
 0x948   :  { %v1357_v55 = vmul.f32 %v1704_v9, %v1356_v14 }
 0x94a   :  { %v1361_v56 = vsel %vm1360_vm4, %v1704_v9, %v1357_v55 }
 0x94b   :  { %v1362_v57 = vmul.f32 %v1361_v56, %v1350_v54 }
 0x94d   :  { %v1364_v17 = vmul.f32 %v1362_v57, %v1346_v0  ;;  %1623 = vmatmul.msk.f32.vlgmr.msra.gmra.mxu0 %vm1367_vm5, %v1362_v57 }
 0x94f   :  { %v1365_v18 = vsub.f32 %v1363_v15, %v1364_v17 }
 0x951   :  { %1624 = vmatmul.msk.f32.vlgmr.msra.gmra.mxu1 %vm1367_vm5, %v1365_v18 }
 0x952   :  { %1968 = shalt.err (!%p1965_p12)
}
 0x953   :  { %1492 = dma.vmem_to_hbm [thread:$0]  %s1485_s15, 256, %s1487_s5, [#allocation23], %s2069_s12, %s2069_s12, %s2070_s3  }
 0x954   :  { %s1473_s11 = sshll.u32 %s2236_s4, 4  ;;  %s2081_s8 = smov [#allocation21]   ;;  %s1474_s11 = int_to_ptr.hbm [resolvable:$true] %s1473_s11 }
 0x955   :  { %s1471_s16 = sshll.u32 %s2081_s8, 4  ;;  %s1981_s18 = sshra.s32 %s1474_s11, 4  ;;  %s1472_s16 = int_to_ptr.vmem [resolvable:$true] %s1471_s16  ;;  %s1982_s18 = int_to_ptr.hbm [resolvable:$true] %s1981_s18 }
 0x956   :  { %s1983_s22 = scalar_lea.hbm %s1982_s18, 16  ;;  %s1985_s14 = scalar_lea.hbm %s2236_s4, 16 }
 0x957   :  { %p1984_p13 = scmp.ne.s32.totalorder %s1982_s18, %s1983_s22  ;;  %p1986_p0 = scmp.lt.s32.totalorder %s1982_s18, %s2236_s4 }
 0x958   :  { %p1987_p1 = scmp.lt.s32.totalorder %s1985_s14, %s1983_s22 }
 0x95a   :  { %p1988_p2 = por %p1987_p1, %p1986_p0 }
 0x95c   :  { %p1989_p3 = pnand %p1988_p2, %p1984_p13 }
 0x95e   :  { %1992 = shalt.err (!%p1989_p3)
}
 0x95f   :  { %1479 = dma.vmem_to_hbm [thread:$0]  %s1472_s16, 256, %s1474_s11, [#allocation6], %s2069_s12, %s2069_s12, %s2070_s3   ;;  %v1460_v28 = vpop.permute.xlu1 %1459  ;;  %v1458_v33 = vpop.permute.xlu0 %1457 }
 0x960   :  { %s2082_s4 = smov [#allocation24]   ;;  %s1499_s21 = sshll.u32 %s2246_s24, 4  ;;  %s1500_s21 = int_to_ptr.hbm [resolvable:$true] %s1499_s21 }
 0x961   :  { %s1497_s23 = sshll.u32 %s2082_s4, 4  ;;  %s2005_s25 = sshra.s32 %s1500_s21, 4  ;;  %s1498_s23 = int_to_ptr.vmem [resolvable:$true] %s1497_s23  ;;  %s2006_s25 = int_to_ptr.hbm [resolvable:$true] %s2005_s25 }
 0x962   :  { %s2007_s29 = scalar_lea.hbm %s2006_s25, 16  ;;  %s2009_s26 = scalar_lea.hbm %s2246_s24, 16 }
 0x963   :  { %p2008_p4 = scmp.ne.s32.totalorder %s2006_s25, %s2007_s29  ;;  %p2010_p5 = scmp.lt.s32.totalorder %s2006_s25, %s2246_s24 }
 0x964   :  { %p2011_p6 = scmp.lt.s32.totalorder %s2009_s26, %s2007_s29 }
 0x966   :  { %p2012_p7 = por %p2011_p6, %p2010_p5 }
 0x968   :  { %p2013_p8 = pnand %p2012_p7, %p2008_p4 }
 0x9ca   :  { %v1388_v19 = vpop.f32.mrf.mxu0 }
 0x9cb   :  { %v1414_v20 = vperm.slane %v1388_v19, 0 }
 0x9cd   :  { %v1415_v22 = vmul.f32 %v1414_v20, %v2475_v11  ;;  %v1416_v23 = vmul.f32 %v1414_v20, %v2479_v29 }
 0x9ce   :  { %v1411_v21 = vpop.f32.mrf.mxu1 }
 0x9cf   :  { %v1417_v24 = vperm.slane %v1411_v21, 0 }
 0x9d1   :  { %v1418_v25 = vadd.f32 %v1417_v24, %v1415_v22  ;;  %v1419_v16 = vadd.f32 %v1417_v24, %v1416_v23 }
 0x9d3   :  { %v1420_v26 = vmax.f32 %v1418_v25, 0.0  ;;  %v1421_v27 = vmax.f32 %v1419_v16, 0.0 }
 0x9d5   :  { %v1454_v31 = vmul.f32 %v2499_v53, %v1421_v27  ;;  %v1453_v32 = vmul.f32 %v2495_v6, %v1420_v26 }
 0x9d7   :  { %v1464_v37 = vadd.f32 %v1460_v28, %v1454_v31  ;;  %v1463_v11 = vadd.f32 %v1458_v33, %v1453_v32 }
 0x9d9   :  { %1466 = vst.msk [vmem:[#allocation24 + $0x8] sm:$0xff] %vm506_vm6, %v1464_v37 }
 0x9da   :  { %1465 = vst.msk [vmem:[#allocation24] sm:$0xff] %vm506_vm6, %v1463_v11 }
 0x9db   :  { %2016 = shalt.err (!%p2013_p8)
}
 0x9dc   :  { %1505 = dma.vmem_to_hbm [thread:$0]  %s1498_s23, 256, %s1500_s21, [#allocation23], %s2069_s12, %s2069_s12, %s2070_s3  }
 0x9dd   :  { %2029 = dma.done.wait [#allocation6], 256  }
 0x9de   :  { %2030 = vsyncadd [#allocation6], 4294967040 }
 0x9df   :  { %2031 = dma.done.wait [#allocation23], 512  }
 0x9e0   :  { %2032 = vsyncadd [#allocation23], 4294966784 }
 0x9e1   :  { %1518 = vsyncpa [#allocation5], 1 }
 0x9e2   :  { %1519 = vsyncpa [#allocation8], 1 }
 0x9e3   :  { %1520 = vsyncpa [#allocation11], 1 }
 0x9e4   :  { %1521 = vsyncpa [#allocation14], 1 }
 0x9e5   :  { %1522 = vsyncpa [#allocation17], 1 }
 0x9e6   :  { %1523 = vsyncpa [#allocation20], 1 }
 0x9e7   :  { %1524 = vsyncpa [#allocation6], 1 }
 0x9e8   :  { %1525 = vsyncpa [#allocation23], 1 }

</bundles_post_ra>
